<compile_context>
chip_gen: v5e
topology: v5e:2x2
jax: 0.10.0
libtpu: 0.0.40
codegen_flags: <defaults>
</compile_context>

<pallas_src>
import jax
import jax.numpy as jnp
from jax.experimental import pallas as pl
from jax.experimental.pallas import tpu as pltpu

_LEFT = 16  # sublane-aligned start (bf16 packing) of the interior in the mid scratch


def _round_up(x, m):
    return (x + m - 1) // m * m


def _make_kernel(Ho, Wo, Cin_p, Cout_p):
    M = Ho * Wo
    L = _LEFT

    def kernel(cols_ref, w1_ref, w2_ref, we_ref, bn_ref, o_ref, mid_ref):
        cols = cols_ref[0]                                   # (M, 9*Cin_p) bf16

        sc1, bi1 = bn_ref[0:1, :], bn_ref[1:2, :]
        sc2, bi2 = bn_ref[2:3, :], bn_ref[3:4, :]
        sce, bie = bn_ref[4:5, :], bn_ref[5:6, :]

        # ---- conv1: 3x3 stride s0 as a single deep matmul + BN1 + relu ----
        acc1 = jnp.dot(cols, w1_ref[...], preferred_element_type=jnp.float32)
        out1 = jnp.maximum(acc1 * sc1 + bi1, 0.0)

        # ---- shortcut: 1x1 conv stride s0 (= centre tap of im2col) + BN_e ----
        xc = cols[:, 4 * Cin_p:5 * Cin_p]                    # lane-aligned slice
        extra = jnp.dot(xc, we_ref[...], preferred_element_type=jnp.float32)
        extra = extra * sce + bie

        # ---- stash conv1 output (bf16) into the padded scratch for conv2 ----
        # Only the 1-pixel halo that conv2 reads needs zeros; re-zero it every
        # step so correctness does not depend on which core ran step 0.
        zrow = jnp.zeros((1, Wo + 2, Cout_p), jnp.bfloat16)
        mid_ref[0:1, L - 1:L + Wo + 1, :] = zrow
        mid_ref[Ho + 1:Ho + 2, L - 1:L + Wo + 1, :] = zrow
        zcol = jnp.zeros((Ho, 1, Cout_p), jnp.bfloat16)
        mid_ref[1:Ho + 1, L - 1:L, :] = zcol
        mid_ref[1:Ho + 1, L + Wo:L + Wo + 1, :] = zcol
        # interior write is aligned on the W (sublane) axis (offset = 16)
        mid_ref[1:Ho + 1, L:L + Wo, :] = (
            out1.reshape(Ho, Wo, Cout_p).astype(jnp.bfloat16))

        # ---- conv2: 3x3, stride 1, padding 1 as ONE deep matmul (K=9*Cout_p) ----
        patches = [
            mid_ref[kh:kh + Ho, L - 1 + kw:L - 1 + kw + Wo, :].reshape(M, Cout_p)
            for kh in range(3) for kw in range(3)
        ]
        cols2 = jnp.concatenate(patches, axis=-1)            # (M, 9*Cout_p) bf16
        acc2 = jnp.dot(cols2, w2_ref[...], preferred_element_type=jnp.float32)
        out2 = acc2 * sc2 + bi2

        # ---- residual add + relu ----
        o_ref[0] = jnp.maximum(out2 + extra, 0.0).astype(o_ref.dtype)

    return kernel


def restnet_down_block(x_nchw, p, stride, eps=1e-5):
    """Forward pass of RestNetDownBlock. Input/output are NCHW (PyTorch)."""
    s0, s1 = int(stride[0]), int(stride[1])
    assert s1 == 1, "residual add requires stride[1] == 1 (ResNet down block)"
    N, Cin, H, W = x_nchw.shape
    Cout = p["w1"].shape[0]
    Ho = (H - 1) // s0 + 1
    Wo = (W - 1) // s0 + 1

    Cin_p = _round_up(Cin, 32)      # keeps the centre-tap slice lane-aligned
    Cout_p = _round_up(Cout, 128)   # lane-dense output / scratch / accumulators

    def fold(conv_b, gamma, beta, mean, var):
        scale = gamma / jnp.sqrt(var + eps)
        bias = beta + (conv_b - mean) * scale
        scale = jnp.pad(scale, (0, Cout_p - Cout))
        bias = jnp.pad(bias, (0, Cout_p - Cout))
        return (scale.reshape(1, Cout_p).astype(jnp.float32),
                bias.reshape(1, Cout_p).astype(jnp.float32))

    sc1, bi1 = fold(p["b1"], p["g1"], p["beta1"], p["m1"], p["v1"])
    sc2, bi2 = fold(p["b2"], p["g2"], p["beta2"], p["m2"], p["v2"])
    sce, bie = fold(p["be"], p["ge"], p["betae"], p["me"], p["ve"])
    bn = jnp.concatenate([sc1, bi1, sc2, bi2, sce, bie], axis=0)  # (6, Cout_p) f32

    # PyTorch OIHW -> HWIO, zero-pad channels, cast to bf16 for the MXU.
    w1 = jnp.transpose(p["w1"], (2, 3, 1, 0))
    w1 = jnp.pad(w1, ((0, 0), (0, 0), (0, Cin_p - Cin), (0, Cout_p - Cout)))
    w1 = w1.reshape(9 * Cin_p, Cout_p).astype(jnp.bfloat16)

    w2 = jnp.transpose(p["w2"], (2, 3, 1, 0))
    w2 = jnp.pad(w2, ((0, 0), (0, 0), (0, Cout_p - Cout), (0, Cout_p - Cout)))
    w2 = w2.reshape(9 * Cout_p, Cout_p).astype(jnp.bfloat16)

    we = jnp.transpose(p["we"], (2, 3, 1, 0)).reshape(Cin, Cout)
    we = jnp.pad(we, ((0, Cin_p - Cin), (0, Cout_p - Cout))).astype(jnp.bfloat16)

    # NCHW -> NHWC, spatial zero-pad 1, channel pad, im2col for conv1 (stride s0).
    x = jnp.transpose(x_nchw, (0, 2, 3, 1))
    x = jnp.pad(x, ((0, 0), (1, 1), (1, 1), (0, Cin_p - Cin)))
    taps = []
    for kh in range(3):
        for kw in range(3):
            taps.append(x[:, kh:kh + (Ho - 1) * s0 + 1:s0,
                          kw:kw + (Wo - 1) * s0 + 1:s0, :])
    cols = jnp.concatenate(taps, axis=-1).reshape(N, Ho * Wo, 9 * Cin_p)
    cols = cols.astype(jnp.bfloat16)

    M = Ho * Wo
    K1 = 9 * Cin_p
    K2 = 9 * Cout_p
    WPAD = _round_up(_LEFT + Wo + 1, 16)   # minimal halo-padded scratch width

    kernel = _make_kernel(Ho, Wo, Cin_p, Cout_p)

    out = pl.pallas_call(
        kernel,
        grid=(N,),
        in_specs=[
            pl.BlockSpec((1, M, K1), lambda n: (n, 0, 0)),
            pl.BlockSpec((K1, Cout_p), lambda n: (0, 0)),
            pl.BlockSpec((K2, Cout_p), lambda n: (0, 0)),
            pl.BlockSpec((Cin_p, Cout_p), lambda n: (0, 0)),
            pl.BlockSpec((6, Cout_p), lambda n: (0, 0)),
        ],
        out_specs=pl.BlockSpec((1, M, Cout_p), lambda n: (n, 0, 0)),
        out_shape=jax.ShapeDtypeStruct((N, M, Cout_p), jnp.float32),
        scratch_shapes=[pltpu.VMEM((Ho + 2, WPAD, Cout_p), jnp.bfloat16)],
        compiler_params=pltpu.CompilerParams(dimension_semantics=("parallel",)),
    )(cols, w1, w2, we, bn)

    out = out.reshape(N, Ho, Wo, Cout_p)[..., :Cout]
    return jnp.transpose(out, (0, 3, 1, 2))   # NHWC -> NCHW


def _reference(x, p, stride, eps=1e-5):
    """Pure-JAX (XLA conv) reference of the PyTorch forward, eval-mode BN."""
    def conv(x, w, b, s, pad):
        y = jax.lax.conv_general_dilated(
            x, w, window_strides=(s, s), padding=[(pad, pad), (pad, pad)],
            dimension_numbers=("NCHW", "OIHW", "NCHW"))
        return y + b[None, :, None, None]

    def bn(x, g, beta, m, v):
        return (g[None, :, None, None] * (x - m[None, :, None, None])
                / jnp.sqrt(v[None, :, None, None] + eps) + beta[None, :, None, None])

    s0, s1 = int(stride[0]), int(stride[1])
    extra = bn(conv(x, p["we"], p["be"], s0, 0), p["ge"], p["betae"], p["me"], p["ve"])
    out = jax.nn.relu(bn(conv(x, p["w1"], p["b1"], s0, 1), p["g1"], p["beta1"], p["m1"], p["v1"]))
    out = bn(conv(out, p["w2"], p["b2"], s1, 1), p["g2"], p["beta2"], p["m2"], p["v2"])
    return jax.nn.relu(extra + out)


if __name__ == "__main__":
    N, Cin, Cout, H, W = 2, 4, 8, 16, 16
    stride = (2, 1)   # typical ResNet down block: conv1 / shortcut downsample by 2

    key = jax.random.PRNGKey(0)
    ks = jax.random.split(key, 20)

    def bn_params(k0, k1, k2, k3):
        return {
            "g": jax.random.uniform(k0, (Cout,), jnp.float32, 0.5, 1.5),
            "beta": jax.random.normal(k1, (Cout,), jnp.float32) * 0.1,
            "m": jax.random.normal(k2, (Cout,), jnp.float32) * 0.1,
            "v": jax.random.uniform(k3, (Cout,), jnp.float32, 0.5, 1.5),
        }

    bn1 = bn_params(ks[2], ks[3], ks[4], ks[5])
    bn2 = bn_params(ks[8], ks[9], ks[10], ks[11])
    bne = bn_params(ks[14], ks[15], ks[16], ks[17])

    p = {
        "w1": jax.random.normal(ks[0], (Cout, Cin, 3, 3), jnp.float32) * 0.2,
        "b1": jax.random.normal(ks[1], (Cout,), jnp.float32) * 0.1,
        "g1": bn1["g"], "beta1": bn1["beta"], "m1": bn1["m"], "v1": bn1["v"],
        "w2": jax.random.normal(ks[6], (Cout, Cout, 3, 3), jnp.float32) * 0.2,
        "b2": jax.random.normal(ks[7], (Cout,), jnp.float32) * 0.1,
        "g2": bn2["g"], "beta2": bn2["beta"], "m2": bn2["m"], "v2": bn2["v"],
        "we": jax.random.normal(ks[12], (Cout, Cin, 1, 1), jnp.float32) * 0.2,
        "be": jax.random.normal(ks[13], (Cout,), jnp.float32) * 0.1,
        "ge": bne["g"], "betae": bne["beta"], "me": bne["m"], "ve": bne["v"],
    }

    x = jax.random.normal(ks[18], (N, Cin, H, W), jnp.float32)

    out = restnet_down_block(x, p, stride)
    out = jax.block_until_ready(out)

    ref = _reference(x, p, stride)
    assert out.shape == ref.shape, (out.shape, ref.shape)
    max_err = float(jnp.max(jnp.abs(out - ref)))
    # bf16 MXU operands with f32 accumulation -> slightly looser tolerance than pure f32
    if not bool(jnp.allclose(out, ref, atol=5e-2, rtol=5e-2)):
        raise AssertionError(f"kernel does not match reference, max abs err = {max_err}")

    print("KERNEL_OK")
</pallas_src>

<mosaic_0001>
module attributes {stable_mosaic.version = 11 : i64} {
  func.func @kernel(%arg0: i32, %arg1: memref<1x64x288xbf16, #tpu.memory_space<vmem>>, %arg2: memref<288x128xbf16, #tpu.memory_space<vmem>>, %arg3: memref<1152x128xbf16, #tpu.memory_space<vmem>>, %arg4: memref<32x128xbf16, #tpu.memory_space<vmem>>, %arg5: memref<6x128xf32, #tpu.memory_space<vmem>>, %arg6: memref<1x64x128xf32, #tpu.memory_space<vmem>>, %arg7: memref<10x32x128xbf16, #tpu.memory_space<vmem>>) attributes {dimension_semantics = [#tpu.dimension_semantics<parallel>], iteration_bounds = array<i64: 2>, scalar_prefetch = 0 : i64, scratch_operands = 1 : i64, tpu.core_type = #tpu.core_type<tc>, window_params = [{transform_indices = @transform_0, window_bounds = array<i64: 1, 64, 288>}, {pipeline_mode = #tpu.pipeline_mode<synchronous>, transform_indices = @transform_1, window_bounds = array<i64: 288, 128>}, {pipeline_mode = #tpu.pipeline_mode<synchronous>, transform_indices = @transform_2, window_bounds = array<i64: 1152, 128>}, {pipeline_mode = #tpu.pipeline_mode<synchronous>, transform_indices = @transform_3, window_bounds = array<i64: 32, 128>}, {pipeline_mode = #tpu.pipeline_mode<synchronous>, transform_indices = @transform_4, window_bounds = array<i64: 6, 128>}, {transform_indices = @transform_5, window_bounds = array<i64: 1, 64, 128>}]} {
    %c0 = arith.constant 0 : index
    %c0_0 = arith.constant 0 : index
    %c0_1 = arith.constant 0 : index
    %0 = vector.load %arg1[%c0, %c0_0, %c0_1] : memref<1x64x288xbf16, #tpu.memory_space<vmem>>, vector<1x64x288xbf16>
    %1 = vector.shape_cast %0 : vector<1x64x288xbf16> to vector<64x288xbf16>
    %c0_2 = arith.constant 0 : index
    %c0_3 = arith.constant 0 : index
    %2 = vector.load %arg5[%c0_2, %c0_3] : memref<6x128xf32, #tpu.memory_space<vmem>>, vector<1x128xf32>
    %c1 = arith.constant 1 : index
    %c0_4 = arith.constant 0 : index
    %3 = vector.load %arg5[%c1, %c0_4] : memref<6x128xf32, #tpu.memory_space<vmem>>, vector<1x128xf32>
    %c2 = arith.constant 2 : index
    %c0_5 = arith.constant 0 : index
    %4 = vector.load %arg5[%c2, %c0_5] : memref<6x128xf32, #tpu.memory_space<vmem>>, vector<1x128xf32>
    %c3 = arith.constant 3 : index
    %c0_6 = arith.constant 0 : index
    %5 = vector.load %arg5[%c3, %c0_6] : memref<6x128xf32, #tpu.memory_space<vmem>>, vector<1x128xf32>
    %c4 = arith.constant 4 : index
    %c0_7 = arith.constant 0 : index
    %6 = vector.load %arg5[%c4, %c0_7] : memref<6x128xf32, #tpu.memory_space<vmem>>, vector<1x128xf32>
    %c5 = arith.constant 5 : index
    %c0_8 = arith.constant 0 : index
    %7 = vector.load %arg5[%c5, %c0_8] : memref<6x128xf32, #tpu.memory_space<vmem>>, vector<1x128xf32>
    %c0_9 = arith.constant 0 : index
    %c0_10 = arith.constant 0 : index
    %8 = vector.load %arg2[%c0_9, %c0_10] : memref<288x128xbf16, #tpu.memory_space<vmem>>, vector<288x128xbf16>
    %cst = arith.constant dense<0.000000e+00> : vector<64x128xf32>
    %9 = tpu.matmul %1, %8, %cst {dimension_numbers = #tpu.dot_dimension_numbers<[1], [0], [0], [1], [0, 0, 1, 1], [], []>} : vector<64x288xbf16>, vector<288x128xbf16>, vector<64x128xf32> -> vector<64x128xf32>
    %10 = vector.broadcast %2 : vector<1x128xf32> to vector<64x128xf32>
    %11 = arith.mulf %9, %10 : vector<64x128xf32>
    %12 = vector.broadcast %3 : vector<1x128xf32> to vector<64x128xf32>
    %13 = arith.addf %11, %12 : vector<64x128xf32>
    %cst_11 = arith.constant 0.000000e+00 : f32
    %14 = vector.broadcast %cst_11 : f32 to vector<64x128xf32>
    %15 = arith.maximumf %13, %14 : vector<64x128xf32>
    %16 = vector.extract_strided_slice %1 {offsets = [0, 128], sizes = [64, 32], strides = [1, 1]} : vector<64x288xbf16> to vector<64x32xbf16>
    %c0_12 = arith.constant 0 : index
    %c0_13 = arith.constant 0 : index
    %17 = vector.load %arg4[%c0_12, %c0_13] : memref<32x128xbf16, #tpu.memory_space<vmem>>, vector<32x128xbf16>
    %cst_14 = arith.constant dense<0.000000e+00> : vector<64x128xf32>
    %18 = tpu.matmul %16, %17, %cst_14 {dimension_numbers = #tpu.dot_dimension_numbers<[1], [0], [0], [1], [0, 0, 1, 1], [], []>} : vector<64x32xbf16>, vector<32x128xbf16>, vector<64x128xf32> -> vector<64x128xf32>
    %19 = vector.broadcast %6 : vector<1x128xf32> to vector<64x128xf32>
    %20 = arith.mulf %18, %19 : vector<64x128xf32>
    %21 = vector.broadcast %7 : vector<1x128xf32> to vector<64x128xf32>
    %22 = arith.addf %20, %21 : vector<64x128xf32>
    %cst_15 = arith.constant 0.000000e+00 : bf16
    %23 = vector.broadcast %cst_15 : bf16 to vector<1x10x128xbf16>
    %c0_16 = arith.constant 0 : index
    %c15 = arith.constant 15 : index
    %c0_17 = arith.constant 0 : index
    %24 = vector.load %arg7[%c0_16, %c15, %c0_17] : memref<10x32x128xbf16, #tpu.memory_space<vmem>>, vector<1x10x128xbf16>
    tpu.vector_store %arg7[%c0_16, %c15, %c0_17], %23 {strides = array<i32>} : memref<10x32x128xbf16, #tpu.memory_space<vmem>>, vector<1x10x128xbf16>,
    %c9 = arith.constant 9 : index
    %c15_18 = arith.constant 15 : index
    %c0_19 = arith.constant 0 : index
    %25 = vector.load %arg7[%c9, %c15_18, %c0_19] : memref<10x32x128xbf16, #tpu.memory_space<vmem>>, vector<1x10x128xbf16>
    tpu.vector_store %arg7[%c9, %c15_18, %c0_19], %23 {strides = array<i32>} : memref<10x32x128xbf16, #tpu.memory_space<vmem>>, vector<1x10x128xbf16>,
    %cst_20 = arith.constant 0.000000e+00 : bf16
    %26 = vector.broadcast %cst_20 : bf16 to vector<8x1x128xbf16>
    %c1_21 = arith.constant 1 : index
    %c15_22 = arith.constant 15 : index
    %c0_23 = arith.constant 0 : index
    %27 = vector.load %arg7[%c1_21, %c15_22, %c0_23] : memref<10x32x128xbf16, #tpu.memory_space<vmem>>, vector<8x1x128xbf16>
    tpu.vector_store %arg7[%c1_21, %c15_22, %c0_23], %26 {strides = array<i32>} : memref<10x32x128xbf16, #tpu.memory_space<vmem>>, vector<8x1x128xbf16>,
    %c1_24 = arith.constant 1 : index
    %c24 = arith.constant 24 : index
    %c0_25 = arith.constant 0 : index
    %28 = vector.load %arg7[%c1_24, %c24, %c0_25] : memref<10x32x128xbf16, #tpu.memory_space<vmem>>, vector<8x1x128xbf16>
    tpu.vector_store %arg7[%c1_24, %c24, %c0_25], %26 {strides = array<i32>} : memref<10x32x128xbf16, #tpu.memory_space<vmem>>, vector<8x1x128xbf16>,
    %29 = vector.shape_cast %15 : vector<64x128xf32> to vector<8x8x128xf32>
    %30 = arith.truncf %29 : vector<8x8x128xf32> to vector<8x8x128xbf16>
    %c1_26 = arith.constant 1 : index
    %c16 = arith.constant 16 : index
    %c0_27 = arith.constant 0 : index
    %31 = vector.load %arg7[%c1_26, %c16, %c0_27] : memref<10x32x128xbf16, #tpu.memory_space<vmem>>, vector<8x8x128xbf16>
    tpu.vector_store %arg7[%c1_26, %c16, %c0_27], %30 {strides = array<i32>} : memref<10x32x128xbf16, #tpu.memory_space<vmem>>, vector<8x8x128xbf16>,
    %c0_28 = arith.constant 0 : index
    %c15_29 = arith.constant 15 : index
    %c0_30 = arith.constant 0 : index
    %32 = vector.load %arg7[%c0_28, %c15_29, %c0_30] : memref<10x32x128xbf16, #tpu.memory_space<vmem>>, vector<8x8x128xbf16>
    %33 = vector.shape_cast %32 : vector<8x8x128xbf16> to vector<64x128xbf16>
    %c0_31 = arith.constant 0 : index
    %c16_32 = arith.constant 16 : index
    %c0_33 = arith.constant 0 : index
    %34 = vector.load %arg7[%c0_31, %c16_32, %c0_33] : memref<10x32x128xbf16, #tpu.memory_space<vmem>>, vector<8x8x128xbf16>
    %35 = vector.shape_cast %34 : vector<8x8x128xbf16> to vector<64x128xbf16>
    %c0_34 = arith.constant 0 : index
    %c17 = arith.constant 17 : index
    %c0_35 = arith.constant 0 : index
    %36 = vector.load %arg7[%c0_34, %c17, %c0_35] : memref<10x32x128xbf16, #tpu.memory_space<vmem>>, vector<8x8x128xbf16>
    %37 = vector.shape_cast %36 : vector<8x8x128xbf16> to vector<64x128xbf16>
    %c1_36 = arith.constant 1 : index
    %c15_37 = arith.constant 15 : index
    %c0_38 = arith.constant 0 : index
    %38 = vector.load %arg7[%c1_36, %c15_37, %c0_38] : memref<10x32x128xbf16, #tpu.memory_space<vmem>>, vector<8x8x128xbf16>
    %39 = vector.shape_cast %38 : vector<8x8x128xbf16> to vector<64x128xbf16>
    %c1_39 = arith.constant 1 : index
    %c16_40 = arith.constant 16 : index
    %c0_41 = arith.constant 0 : index
    %40 = vector.load %arg7[%c1_39, %c16_40, %c0_41] : memref<10x32x128xbf16, #tpu.memory_space<vmem>>, vector<8x8x128xbf16>
    %41 = vector.shape_cast %40 : vector<8x8x128xbf16> to vector<64x128xbf16>
    %c1_42 = arith.constant 1 : index
    %c17_43 = arith.constant 17 : index
    %c0_44 = arith.constant 0 : index
    %42 = vector.load %arg7[%c1_42, %c17_43, %c0_44] : memref<10x32x128xbf16, #tpu.memory_space<vmem>>, vector<8x8x128xbf16>
    %43 = vector.shape_cast %42 : vector<8x8x128xbf16> to vector<64x128xbf16>
    %c2_45 = arith.constant 2 : index
    %c15_46 = arith.constant 15 : index
    %c0_47 = arith.constant 0 : index
    %44 = vector.load %arg7[%c2_45, %c15_46, %c0_47] : memref<10x32x128xbf16, #tpu.memory_space<vmem>>, vector<8x8x128xbf16>
    %45 = vector.shape_cast %44 : vector<8x8x128xbf16> to vector<64x128xbf16>
    %c2_48 = arith.constant 2 : index
    %c16_49 = arith.constant 16 : index
    %c0_50 = arith.constant 0 : index
    %46 = vector.load %arg7[%c2_48, %c16_49, %c0_50] : memref<10x32x128xbf16, #tpu.memory_space<vmem>>, vector<8x8x128xbf16>
    %47 = vector.shape_cast %46 : vector<8x8x128xbf16> to vector<64x128xbf16>
    %c2_51 = arith.constant 2 : index
    %c17_52 = arith.constant 17 : index
    %c0_53 = arith.constant 0 : index
    %48 = vector.load %arg7[%c2_51, %c17_52, %c0_53] : memref<10x32x128xbf16, #tpu.memory_space<vmem>>, vector<8x8x128xbf16>
    %49 = vector.shape_cast %48 : vector<8x8x128xbf16> to vector<64x128xbf16>
    %50 = tpu.concatenate %33, %35, %37, %39, %41, %43, %45, %47, %49 in 1 : vector<64x128xbf16>, vector<64x128xbf16>, vector<64x128xbf16>, vector<64x128xbf16>, vector<64x128xbf16>, vector<64x128xbf16>, vector<64x128xbf16>, vector<64x128xbf16>, vector<64x128xbf16> -> vector<64x1152xbf16>
    %c0_54 = arith.constant 0 : index
    %c0_55 = arith.constant 0 : index
    %51 = vector.load %arg3[%c0_54, %c0_55] : memref<1152x128xbf16, #tpu.memory_space<vmem>>, vector<1152x128xbf16>
    %cst_56 = arith.constant dense<0.000000e+00> : vector<64x128xf32>
    %52 = tpu.matmul %50, %51, %cst_56 {dimension_numbers = #tpu.dot_dimension_numbers<[1], [0], [0], [1], [0, 0, 1, 1], [], []>} : vector<64x1152xbf16>, vector<1152x128xbf16>, vector<64x128xf32> -> vector<64x128xf32>
    %53 = vector.broadcast %4 : vector<1x128xf32> to vector<64x128xf32>
    %54 = arith.mulf %52, %53 : vector<64x128xf32>
    %55 = vector.broadcast %5 : vector<1x128xf32> to vector<64x128xf32>
    %56 = arith.addf %54, %55 : vector<64x128xf32>
    %57 = arith.addf %56, %22 : vector<64x128xf32>
    %cst_57 = arith.constant 0.000000e+00 : f32
    %58 = vector.broadcast %cst_57 : f32 to vector<64x128xf32>
    %59 = arith.maximumf %57, %58 : vector<64x128xf32>
    %c0_58 = arith.constant 0 : index
    %c0_59 = arith.constant 0 : index
    %c0_60 = arith.constant 0 : index
    %60 = vector.load %arg6[%c0_58, %c0_59, %c0_60] : memref<1x64x128xf32, #tpu.memory_space<vmem>>, vector<1x64x128xf32>
    %61 = vector.shape_cast %60 : vector<1x64x128xf32> to vector<64x128xf32>
    %62 = vector.shape_cast %59 : vector<64x128xf32> to vector<1x64x128xf32>
    tpu.vector_store %arg6[%c0_58, %c0_59, %c0_60], %62 {strides = array<i32>} : memref<1x64x128xf32, #tpu.memory_space<vmem>>, vector<1x64x128xf32>,
    return
  }
  func.func @transform_0(%arg0: i32) -> (i32, i32, i32) {
    %c0_i32 = arith.constant 0 : i32
    %c0_i32_0 = arith.constant 0 : i32
    %c0_i32_1 = arith.constant 0 : i32
    return %arg0, %c0_i32, %c0_i32_0 : i32, i32, i32
  }
  func.func @transform_1(%arg0: i32) -> (i32, i32) {
    %c0_i32 = arith.constant 0 : i32
    %c0_i32_0 = arith.constant 0 : i32
    %c0_i32_1 = arith.constant 0 : i32
    return %c0_i32, %c0_i32_0 : i32, i32
  }
  func.func @transform_2(%arg0: i32) -> (i32, i32) {
    %c0_i32 = arith.constant 0 : i32
    %c0_i32_0 = arith.constant 0 : i32
    %c0_i32_1 = arith.constant 0 : i32
    return %c0_i32, %c0_i32_0 : i32, i32
  }
  func.func @transform_3(%arg0: i32) -> (i32, i32) {
    %c0_i32 = arith.constant 0 : i32
    %c0_i32_0 = arith.constant 0 : i32
    %c0_i32_1 = arith.constant 0 : i32
    return %c0_i32, %c0_i32_0 : i32, i32
  }
  func.func @transform_4(%arg0: i32) -> (i32, i32) {
    %c0_i32 = arith.constant 0 : i32
    %c0_i32_0 = arith.constant 0 : i32
    %c0_i32_1 = arith.constant 0 : i32
    return %c0_i32, %c0_i32_0 : i32, i32
  }
  func.func @transform_5(%arg0: i32) -> (i32, i32, i32) {
    %c0_i32 = arith.constant 0 : i32
    %c0_i32_0 = arith.constant 0 : i32
    %c0_i32_1 = arith.constant 0 : i32
    return %arg0, %c0_i32, %c0_i32_0 : i32, i32, i32
  }
}

</mosaic_0001>

<bundles_post_ra>
// kernel: tpu_custom_call.1
= control target key start
LH: loop header
LB: loop body
LE: loop exit
PB: predicated region body
PF: predicated region fallthrough
CT: control target
= control target key end

     0   :  { %s4387_s0 = inlined_call_operand.hbm [shape: bf16[2,64,288], index: 0, kind: input, shape index: {}]   ;;  %s4388_s1 = inlined_call_operand.hbm [shape: bf16[288,128], index: 1, kind: input, shape index: {}]   ;;  %s4389_s2 = inlined_call_operand.hbm [shape: bf16[1152,128], index: 2, kind: input, shape index: {}]   ;;  %s4390_s3 = inlined_call_operand.hbm [shape: bf16[32,128], index: 3, kind: input, shape index: {}]   ;;  %s4391_s4 = inlined_call_operand.hbm [shape: f32[6,128], index: 4, kind: input, shape index: {}]   ;;  %s4392_s5 = inlined_call_operand.hbm [shape: f32[2,64,128], index: 5, kind: output, shape index: {}]  }
   0x1   :  { %4393 = sst [smem:[#allocation17_spill]] %s4388_s1 }
   0x2   :  { %10 = vsyncpa [#allocation4], 0 }
   0x3   :  { %12 = vsyncpa [#allocation4 + $0x1], 0 }
   0x4   :  { %13 = vsyncpa [#allocation7], 0 }
   0x5   :  { %14 = vsyncpa [#allocation10], 0 }
   0x6   :  { %15 = vsyncpa [#allocation5], 0 }
   0x7   :  { %17 = vsyncpa [#allocation5 + $0x1], 0  ;;  %s3607_s18 = smov 0   ;;  %s3609_s19 = smov 0  }
   0x8   :  { %s3611_s20 = smov 0   ;;  %s3613_s21 = smov 0  }
   0x9 LB: > { %s3628_s22 = sadd.s32 4294967295, %s3564_s21   ;;  %s2603_s23 = sadd.s32 4294967294, %s3564_s21   ;;  %s3564_s21 = sphi %s3613_s21, %s4413_s21   ;;  %s3560_s20 = sphi %s3611_s20, %s4412_s20   ;;  %s3556_s19 = sphi %s3609_s19, %s4411_s19   ;;  %s3552_s18 = sphi %s3607_s18, %s4410_s18  }
   0xa   : > { %p43_p0 = scmp.ne.s32.totalorder %s3556_s19, %s3552_s18  ;;  %p44_p1 = scmp.eq.s32.totalorder %s3628_s22, 0 }
   0xb   : > { %p151_p2 = scmp.eq.s32.totalorder %s3628_s22, 1  ;;  %p157_p3 = scmp.eq.s32.totalorder %s2603_s23, 1 }
   0xc   : > { %p3637_p4 = por %p44_p1, %p43_p0  ;;  %p2604_p5 = scmp.ge.s32.totalorder %s3564_s21, 1 }
   0xd   : > { %p3642_p6 = por %p157_p3, %p43_p0  ;;  %p164_p7 = scmp.lt.s32.totalorder %s3564_s21, 3 }
   0xe   : > { %s4396_s1 = sld [smem:[#allocation17_spill]]  ;;  %s3566_s30 = smov [#allocation6]  }
   0xf   : > { %p3650_p8 = pnand %p2604_p5, %p164_p7  ;;  %s177_s6 = sshll.u32 %s3566_s30, 4  ;;  %s178_s6 = int_to_ptr.vmem [resolvable:$true] %s177_s6 }
  0x10   : > { %s203_s10 = sshll.u32 %s4390_s3, 4  ;;  %s3567_s11 = smov 64   ;;  %s204_s10 = int_to_ptr.hbm [resolvable:$true] %s203_s10 }
  0x11   : > { %p3260_p9 = pneg %p3650_p8  ;;  %s3568_s12 = smov 4  }
  0x12   : > { %s3569_s13 = smov [#allocation9]   ;;  %s189_s17 = sshll.u32 %s4389_s2, 4  ;;  %s190_s17 = int_to_ptr.hbm [resolvable:$true] %s189_s17 }
  0x13   : > { %p3658_p10 = pnand %p3260_p9, %p44_p1  ;;  %s205_s14 = sshll.u32 %s3569_s13, 4  ;;  %s206_s14 = int_to_ptr.vmem [resolvable:$true] %s205_s14 }
  0x14   : > { %s175_s28 = sshll.u32 %s4396_s1, 4  ;;  %s218_s27 = sshll.u32 %s4391_s4, 4  ;;  %s176_s28 = int_to_ptr.hbm [resolvable:$true] %s175_s28  ;;  %s219_s27 = int_to_ptr.hbm [resolvable:$true] %s218_s27 }
  0x15   : > { %3263 = dma.hbm_to_vmem [thread:$0]  (!%p3658_p10), %s176_s28, 2304, %s178_s6, [#allocation7], %s3567_s11, %s3567_s11, %s3568_s12  }
  0x16   : > { %3269 = dma.hbm_to_vmem [thread:$0]  (!%p3658_p10), %s204_s10, 256, %s206_s14, [#allocation10], %s3567_s11, %s3567_s11, %s3568_s12  }
  0x17   : > { %s3570_s28 = smov [#allocation8]   ;;  %s3571_s6 = smov [#allocation11]  }
  0x18   : > { %s191_s30 = sshll.u32 %s3570_s28, 4  ;;  %s220_s8 = sshll.u32 %s3571_s6, 4  ;;  %s192_s30 = int_to_ptr.vmem [resolvable:$true] %s191_s30  ;;  %s221_s8 = int_to_ptr.vmem [resolvable:$true] %s220_s8 }
  0x19   : > { %3266 = dma.hbm_to_vmem [thread:$0]  (!%p3658_p10), %s190_s17, 9216, %s192_s30, [#allocation7], %s3567_s11, %s3567_s11, %s3568_s12  }
  0x1a   : > { %3272 = dma.hbm_to_vmem [thread:$0]  (!%p3658_p10), %s219_s27, 128, %s221_s8, [#allocation10]  }
  0x1b   : > { %s3681_s9 = sadd.s32 1, %s3564_s21   ;;  %s30_s10 = sadd.s32 1, %s3560_s20 }
  0x1c   : > { %s27_s13 = ssub.s32 %s3564_s21, %s3681_s9  ;;  %p37_p12 = scmp.ne.s32.totalorder %s3560_s20, %s3556_s19 }
  0x1d   : > { %p28_p13 = scmp.eq.s32.totalorder %s27_s13, 0  ;;  %p38_p0 = scmp.eq.s32.totalorder %s3564_s21, 0 }
  0x1e   : > { %p3691_p3 = por %p151_p2, %p37_p12  ;;  %p3285_p5 = scmp.lt.s32.totalorder %s3564_s21, 2 }
  0x1f   : > { %s3697_s11 = scalar_select %p28_p13, %s3560_s20, %s30_s10  }
  0x20   : > { %p39_p7 = por %p38_p0, %p37_p12  ;;  %s231_s12 = sand.u32 1, %s3560_s20  }
  0x21   : > { %s3237_s7 = smul.u32 96, %s231_s12  ;;  %s232_s6 = scalar_lea.sflag [#allocation4], %s231_s12 }
  0x22   : > { %s3238_s15 = smul.u32 96, %s3564_s21  ;;  %p3701_p9 = pnand %p3285_p5, %p39_p7 }
  0x23   : > { %s235_s27 = scalar_lea.vmem [#allocation3], %s3237_s7  ;;  %s3467_s17 = scalar_lea.hbm %s4387_s0, 192 }
  0x24   : > { %s240_s26 = scalar_lea.hbm %s4387_s0, %s3238_s15  ;;  %s243_s28 = sshll.u32 %s235_s27, 4  ;;  %s244_s28 = int_to_ptr.vmem [resolvable:$true] %s243_s28 }
  0x25   : > { %s241_s30 = sshll.u32 %s240_s26, 4  ;;  %p3464_p10 = pneg %p3701_p9  ;;  %s242_s30 = int_to_ptr.hbm [resolvable:$true] %s241_s30 }
  0x26   : > { %s3460_s8 = sshra.s32 %s242_s30, 4  ;;  %s3461_s8 = int_to_ptr.hbm [resolvable:$true] %s3460_s8 }
  0x27   : > { %s3462_s10 = scalar_lea.hbm %s3461_s8, 96  ;;  %p3468_p0 = scmp.lt.s32.totalorder %s3461_s8, %s4387_s0 }
  0x28   : > { %p3463_p2 = scmp.ne.s32.totalorder %s3461_s8, %s3462_s10  ;;  %p3469_p5 = scmp.lt.s32.totalorder %s3467_s17, %s3462_s10 }
  0x2a   : > { %p3465_p12 = pnand %p3464_p10, %p3463_p2  ;;  %p3470_p7 = por %p3469_p5, %p3468_p0 }
  0x2c   : > { %p3466_p13 = pneg %p3465_p12 }
  0x2e   : > { %p3471_p11 = pnand %p3470_p7, %p3466_p13 }
  0x30   : > { %3474 = shalt.err (!%p3471_p11)
}
  0x31   : > { %s3572_s12 = smov 192   ;;  %s3573_s7 = smov 12  }
  0x32   : > { %3276 = dma.hbm_to_vmem [thread:$0]  (!%p3701_p9), %s242_s30, 1536, %s244_s28, %s232_s6, %s3572_s12, %s3572_s12, %s3573_s7  }
  0x33   : > { %255 = sbr.rel (%p3650_p8) target bundleno = 582 (0x246), region = 40  ;;  %s3721_s1 = sand.u32 (!%p3650_p8), 1, %s3556_s19  }
  0x34   : > { %s3239_s26 = smul.u32 (!%p3650_p8), 96, %s3721_s1  ;;  %s258_s27 = scalar_lea.sflag (!%p3650_p8), [#allocation4], %s3721_s1 }
  0x36   : > { %s3725_s8 = scalar_lea.vmem (!%p3650_p8), [#allocation3], %s3239_s26 }
  0x38   : > { %3535 = dma.done.wait (%p3637_p4), %s258_s27, 1536  }
  0x39   : > { %3537 = vsyncadd (%p3637_p4), %s258_s27, 4294965760 }
  0x3a   : > { %3539 = dma.done.wait (%p44_p1), [#allocation7], 11520  }
  0x3b   : > { %3541 = vsyncadd (%p44_p1), [#allocation7], 4294955776 }
  0x3c   : > { %3543 = dma.done.wait (%p44_p1), [#allocation10], 384  }
  0x3d   : > { %3545 = vsyncadd (%p44_p1), [#allocation10], 4294966912  ;;  %v3137_v0 = vld [vmem:[#allocation6 + $0x38] sm:$0xff]  ;;  %v3136_v2 = vld [vmem:[#allocation6 + $0x30] sm:$0xff]  ;;  %vm536_vm0 = vcmask 261120   ;;  %vm737_vm1 = vcmask 1043459  }
  0x3e   : > { %v3145_v1 = vld [vmem:[#allocation6 + $0x78] sm:$0xff]  ;;  %549 = vmatpush.bf16.msra.mxu0 %v3137_v0  ;;  %v3144_v3 = vld [vmem:[#allocation6 + $0x70] sm:$0xff]  ;;  %v3147_v4 = vld [vmem:[#allocation6 + $0x88] sm:$0xff]  ;;  %vm738_vm2 = vsmask.f32 7950  ;;  %vm744_vm5 = vcmask 1040384  }
  0x3f   : > { %578 = vmatpush.bf16.msra.mxu1 %v3145_v1  ;;  %613 = vmatpush.bf16.msra.mxu2 %v3147_v4  ;;  %v3146_v5 = vld [vmem:[#allocation6 + $0x80] sm:$0xff]  ;;  %v2627_v6 = vld [vmem:[%s3725_s8 + $0x8] sm:$0xf]  ;;  %v3120_v7 = vld [vmem:[%s3725_s8 + $0x10] sm:$0xf0]  ;;  %s2616_s24 = sshll.u32 %s3721_s1, 6 }
  0x40   : > { %3235 = vmatpush.bf16.msra.mxu3 %v3147_v4  ;;  %v3135_v8 = vld [vmem:[#allocation6 + $0x28] sm:$0xff]  ;;  %v2628_v10 = vor.u32 %v3120_v7, %v2627_v6  ;;  %v3134_v11 = vld [vmem:[#allocation6 + $0x20] sm:$0xff]  ;;  %v3133_v13 = vld [vmem:[#allocation6 + $0x18] sm:$0xff]  ;;  %vm745_vm4 = vsmask.f32 256  ;;  %s4292_s29 = scalar_lea.vmem [#allocation12], %s2616_s24 }
  0x41   : > { %v3143_v9 = vld [vmem:[#allocation6 + $0x68] sm:$0xff]  ;;  %v3142_v12 = vld [vmem:[#allocation6 + $0x60] sm:$0xff]  ;;  %v3141_v14 = vld [vmem:[#allocation6 + $0x58] sm:$0xff]  ;;  %vm839_vm7 = vsmask.f32 4368  ;;  %s3234_s16 = sshll.u32 %s3628_s22, 6 }
  0x42   : > { %550 = vmatpush.bf16.msra.mxu0 %v3136_v2  ;;  %v2651_v15 = vld [vmem:[%s3725_s8 + $0x38] sm:$0xf]  ;;  %v3126_v16 = vld [vmem:[%s3725_s8 + $0x40] sm:$0xf0]  ;;  %v3132_v17 = vld [vmem:[#allocation6 + $0x10] sm:$0xff]  ;;  %s2488_s6 = scalar_lea.hbm %s4392_s5, %s3234_s16  ;;  %s2489_s22 = sshll.u32 %s4292_s29, 4  ;;  %s2490_s22 = int_to_ptr.vmem [resolvable:$true] %s2489_s22 }
  0x43   : > { %579 = vmatpush.bf16.msra.mxu1 %v3144_v3  ;;  %614 = vmatpush.bf16.msra.mxu2 %v3146_v5  ;;  %v3140_v18 = vld [vmem:[#allocation6 + $0x50] sm:$0xff]  ;;  %v2652_v19 = vor.u32 %v3126_v16, %v2651_v15  ;;  %v2639_v20 = vld [vmem:[%s3725_s8 + $0x20] sm:$0xf]  ;;  %v3123_v21 = vld [vmem:[%s3725_s8 + $0x28] sm:$0xf0]  ;;  %s2491_s10 = sshll.u32 %s2488_s6, 4  ;;  %s2492_s10 = int_to_ptr.hbm [resolvable:$true] %s2491_s10 }
  0x44   : > { %3236 = vmatpush.bf16.msra.mxu3 %v3146_v5  ;;  %v3131_v22 = vld [vmem:[#allocation6 + $0x8] sm:$0xff]  ;;  %v2640_v24 = vor.u32 %v3123_v21, %v2639_v20  ;;  %v3130_v25 = vld [vmem:[#allocation6] sm:$0xff]  ;;  %v2621_v30 = vld [vmem:[%s3725_s8 + $0xc] sm:$0xf0]  ;;  %vm953_vm9 = vsmask.f32 3328 }
  0x45   : > { %v3139_v23 = vld [vmem:[#allocation6 + $0x48] sm:$0xff]  ;;  %v3138_v26 = vld [vmem:[#allocation6 + $0x40] sm:$0xff]  ;;  %v2663_v33 = vld [vmem:[%s3725_s8 + $0x50] sm:$0xf]  ;;  %vm954_vm10 = vsmask.f32 7440 }
  0x46   : > { %551 = vmatpush.bf16.msra.mxu0 %v3135_v8  ;;  %2737 = vmatmul.msk.bf16.vlgmr.msra.gmra.mxu2 %vm536_vm0, %v2628_v10  ;;  %v2619_v27 = vld [vmem:[%s3725_s8] sm:$0xf]  ;;  %v3119_v28 = vld [vmem:[%s3725_s8 + $0x8] sm:$0xf0]  ;;  %v3118_v29 = vld [vmem:[%s3725_s8 + $0x4] sm:$0xf] }
  0x47   : > { %580 = vmatpush.bf16.msra.mxu1 %v3143_v9  ;;  %2739 = vmatmul.msk.bf16.vlgmr.msra.gmra.mxu3 %vm536_vm0, %v2652_v19  ;;  %v2620_v31 = vor.u32 %v3119_v28, %v2619_v27  ;;  %v2624_v32 = vor.u32 %v3118_v29, %v2621_v30  ;;  %v3129_v34 = vld [vmem:[%s3725_s8 + $0x58] sm:$0xf0]  ;;  %v2631_v36 = vld [vmem:[%s3725_s8 + $0x18] sm:$0xf]  ;;  %v3122_v37 = vld [vmem:[%s3725_s8 + $0x20] sm:$0xf0] }
  0x48   : > { %v2664_v35 = vor.u32 %v3129_v34, %v2663_v33  ;;  %v3121_v38 = vld [vmem:[%s3725_s8 + $0x1c] sm:$0xf]  ;;  %v2633_v39 = vld [vmem:[%s3725_s8 + $0x24] sm:$0xf0]  ;;  %v2632_v40 = vor.u32 %v3122_v37, %v2631_v36  ;;  %v3148_v43 = vld [vmem:[#allocation9] sm:$0xff]  ;;  %v3574_v8 = vmov 0  }
  0x49   : > { %v2636_v41 = vor.u32 %v3121_v38, %v2633_v39  ;;  %v3149_v42 = vld [vmem:[#allocation9 + $0x8] sm:$0xff]  ;;  %v2643_v44 = vld [vmem:[%s3725_s8 + $0x30] sm:$0xf]  ;;  %v3124_v46 = vld [vmem:[%s3725_s8 + $0x34] sm:$0xf]  ;;  %s2477_s13 = scalar_lea.sflag [#allocation5], %s3721_s1 }
  0x4a   : > { %552 = vmatpush.bf16.msra.mxu0 %v3134_v11  ;;  %696 = vmatpush.bf16.msrb.mxu3 %v3149_v42  ;;  %v3125_v45 = vld [vmem:[%s3725_s8 + $0x38] sm:$0xf0]  ;;  %v2645_v47 = vld [vmem:[%s3725_s8 + $0x3c] sm:$0xf0]  ;;  %v3177_v48 = vld [vmem:[#allocation8 + $0x78] sm:$0xff]  ;;  %s3504_s17 = sshra.s32 %s2492_s10, 4  ;;  %s3505_s17 = int_to_ptr.hbm [resolvable:$true] %s3504_s17 }
  0x4b   : > { %581 = vmatpush.bf16.msra.mxu1 %v3142_v12  ;;  %v2644_v49 = vor.u32 %v3125_v45, %v2643_v44  ;;  %v2648_v50 = vor.u32 %v3124_v46, %v2645_v47  ;;  %v2655_v51 = vld [vmem:[%s3725_s8 + $0x48] sm:$0xf]  ;;  %v3128_v52 = vld [vmem:[%s3725_s8 + $0x50] sm:$0xf0]  ;;  %v3127_v53 = vld [vmem:[%s3725_s8 + $0x4c] sm:$0xf]  ;;  %p3511_p11 = scmp.lt.s32.totalorder %s3505_s17, %s4392_s5 }
  0x4c   : > { %v2657_v54 = vld [vmem:[%s3725_s8 + $0x54] sm:$0xf0]  ;;  %v2656_v55 = vor.u32 %v3128_v52, %v2655_v51  ;;  %v3176_v57 = vld [vmem:[#allocation8 + $0x70] sm:$0xff]  ;;  %v3169_v59 = vld [vmem:[#allocation8 + $0x38] sm:$0xff]  ;;  %743 = vst [vmem:[#allocation2 + $0x8] sm:$0xf] %v3574_v8 }
  0x4d   : > { %v2660_v56 = vor.u32 %v3127_v53, %v2657_v54  ;;  %v3175_v58 = vld [vmem:[#allocation8 + $0x68] sm:$0xff]  ;;  %2173 = vmatpush.bf16.msrb.mxu2 %v3169_v59  ;;  %v3185_v60 = vld [vmem:[#allocation8 + $0xb8] sm:$0xff]  ;;  %v3174_v61 = vld [vmem:[#allocation8 + $0x60] sm:$0xff]  ;;  %754 = vst [vmem:[#allocation2 + $0x98] sm:$0xf] %v3574_v8  ;;  %s3506_s23 = scalar_lea.hbm %s3505_s17, 64 }
  0x4e   : > { %553 = vmatpush.bf16.msra.mxu0 %v3133_v13  ;;  %697 = vmatpush.bf16.msrb.mxu3 %v3148_v43  ;;  %v3168_v62 = vld [vmem:[#allocation8 + $0x30] sm:$0xff]  ;;  %v3173_v0 = vld [vmem:[#allocation8 + $0x58] sm:$0xff]  ;;  %v3167_v1 = vld [vmem:[#allocation8 + $0x28] sm:$0xff]  ;;  %p3507_p1 = scmp.ne.s32.totalorder %s3505_s17, %s3506_s23  ;;  %s3510_s7 = scalar_lea.hbm %s4392_s5, 128 }
  0x4f   : > { %582 = vmatpush.bf16.msra.mxu1 %v3141_v14  ;;  %v3184_v63 = vld [vmem:[#allocation8 + $0xb0] sm:$0xff]  ;;  %v3193_v2 = vld [vmem:[#allocation8 + $0xf8] sm:$0xff]  ;;  %v3183_v3 = vld [vmem:[#allocation8 + $0xa8] sm:$0xff]  ;;  %p3512_p9 = scmp.lt.s32.totalorder %s3510_s7, %s3506_s23 }
  0x50   : > { %v3172_v4 = vld [vmem:[#allocation8 + $0x50] sm:$0xff]  ;;  %v3166_v5 = vld [vmem:[#allocation8 + $0x20] sm:$0xff]  ;;  %vm3771_vm3 = vmand %vm737_vm1, %vm738_vm2  ;;  %p3508_p4 = pnand %p3507_p1, %p3691_p3 }
  0x51   : > { %2174 = vmatpush.bf16.msrb.mxu2 %v3168_v62  ;;  %v3192_v6 = vld [vmem:[#allocation8 + $0xf0] sm:$0xff]  ;;  %v3182_v7 = vld [vmem:[#allocation8 + $0xa0] sm:$0xff]  ;;  %v3171_v11 = vld [vmem:[#allocation8 + $0x48] sm:$0xff]  ;;  %p3513_p2 = por %p3512_p9, %p3511_p11 }
  0x52   : > { %554 = vmatpush.bf16.msra.mxu0 %v3132_v17  ;;  %2202 = vmatpush.bf16.msra.mxu3 %v3177_v48  ;;  %v740_v10 = vld [vmem:[#allocation2 + $0x4] sm:$0x8]  ;;  %v3165_v13 = vld [vmem:[#allocation8 + $0x18] sm:$0xff]  ;;  %v3191_v14 = vld [vmem:[#allocation8 + $0xe8] sm:$0xff]  ;;  %p3509_p8 = pneg %p3508_p4 }
  0x53   : > { %583 = vmatpush.bf16.msra.mxu1 %v3140_v18  ;;  %v741_v12 = vsel %vm3771_vm3, 0, %v740_v10  ;;  %v759_v15 = vld [vmem:[#allocation2 + $0x14] sm:$0x8]  ;;  %v747_v17 = vld [vmem:[#allocation2 + $0xc] sm:$0x1]  ;;  %vm3780_vm6 = vmand %vm744_vm5, %vm745_vm4 }
  0x54   : > { %742 = vst [vmem:[#allocation2 + $0x4] sm:$0x8] %v741_v12  ;;  %v760_v16 = vsel %vm3771_vm3, 0, %v759_v15  ;;  %v783_v18 = vld [vmem:[#allocation2 + $0x1c] sm:$0x1]  ;;  %v3181_v19 = vld [vmem:[#allocation8 + $0x98] sm:$0xff]  ;;  %vm3809_vm8 = vmor %vm745_vm4, %vm839_vm7  ;;  %p3514_p10 = pnand %p3513_p2, %p3509_p8 }
  0x55   : > { %2175 = vmatpush.bf16.msrb.mxu2 %v3167_v1  ;;  %761 = vst [vmem:[#allocation2 + $0x14] sm:$0x8] %v760_v16  ;;  %v3170_v21 = vld [vmem:[#allocation8 + $0x40] sm:$0xff]  ;;  %v762_v27 = vld [vmem:[#allocation2 + $0x24] sm:$0x8]  ;;  %v3163_v29 = vld [vmem:[#allocation8 + $0x8] sm:$0xff] }
  0x56   : > { %555 = vmatpush.bf16.msra.mxu0 %v3131_v22  ;;  %2738 = vmatmul.msk.bf16.gmra.mxu2 %vm536_vm0, %v2640_v24  ;;  %v748_v22 = vsel %vm3780_vm6, 0, %v747_v17  ;;  %v3164_v24 = vld [vmem:[#allocation8 + $0x10] sm:$0xff]  ;;  %v763_v28 = vsel %vm3771_vm3, 0, %v762_v27  ;;  %v3189_v30 = vld [vmem:[#allocation8 + $0xd8] sm:$0xff]  ;;  %v3162_v34 = vld [vmem:[#allocation8] sm:$0xff] }
  0x57   : > { %584 = vmatpush.bf16.msra.mxu1 %v3139_v23  ;;  %2740 = vmatmul.msk.bf16.gmra.mxu3 %vm536_vm0, %v2664_v35  ;;  %v784_v23 = vsel %vm3780_vm6, 0, %v783_v18  ;;  %749 = vst [vmem:[#allocation2 + $0xc] sm:$0x1] %v748_v22  ;;  %v3188_v35 = vld [vmem:[#allocation8 + $0xd0] sm:$0xff]  ;;  %v3178_v36 = vld [vmem:[#allocation8 + $0x80] sm:$0xff]  ;;  %v3187_v38 = vld [vmem:[#allocation8 + $0xc8] sm:$0xff] }
  0x58   : > { %2203 = vmatpush.bf16.msra.mxu3 %v3176_v57  ;;  %785 = vst [vmem:[#allocation2 + $0x1c] sm:$0x1] %v784_v23  ;;  %v765_v39 = vld [vmem:[#allocation2 + $0x34] sm:$0x8]  ;;  %v824_v42 = vld [vmem:[#allocation2 + $0x8] sm:$0xf]  ;;  %vm3820_vm11 = vmor %vm953_vm9, %vm954_vm10 }
  0x59   : > { %2176 = vmatpush.bf16.msrb.mxu2 %v3166_v5  ;;  %764 = vst [vmem:[#allocation2 + $0x24] sm:$0x8] %v763_v28  ;;  %v766_v43 = vsel %vm3771_vm3, 0, %v765_v39  ;;  %v3794_v45 = vld [vmem:[#allocation11] ss:$0 sm:$0xff]  ;;  %v847_v51 = vshrl.u32 %v824_v42, 16 }
  0x5a   : > { %556 = vmatpush.bf16.msra.mxu0 %v3130_v25  ;;  %v3190_v25 = vld [vmem:[#allocation8 + $0xe0] sm:$0xff]  ;;  %767 = vst [vmem:[#allocation2 + $0x34] sm:$0x8] %v766_v43  ;;  %v789_v46 = vld [vmem:[#allocation2 + $0x3c] sm:$0x1]  ;;  %v850_v53 = vshll.u32 %v824_v42, 16 }
  0x5b   : > { %585 = vmatpush.bf16.msra.mxu1 %v3138_v26  ;;  %v3180_v26 = vld [vmem:[#allocation8 + $0x90] sm:$0xff]  ;;  %v790_v48 = vsel %vm3780_vm6, 0, %v789_v46  ;;  %v3186_v52 = vld [vmem:[#allocation8 + $0xc0] sm:$0xff]  ;;  %v849_v59 = vrot.slane %v847_v51, 7  ;;  %v956_v62 = vrot.slane %v847_v51, 4  ;;  %v3201_v22 = vld [vmem:[#allocation8 + $0x138] sm:$0xff] }
  0x5c   : > { %2204 = vmatpush.bf16.msra.mxu3 %v3175_v58  ;;  %v3796_v47 = vld [vmem:[#allocation11 + $0x1] ss:$0 sm:$0xff]  ;;  %791 = vst [vmem:[#allocation2 + $0x3c] sm:$0x1] %v790_v48  ;;  %v825_v58 = vld [vmem:[#allocation2 + $0x14] sm:$0x8] }
  0x5d   : > { %557 = vmatmul.bf16.vlgmr.msra.gmra.mxu0 %v2620_v31  ;;  %2177 = vmatpush.bf16.msrb.mxu2 %v3165_v13  ;;  %v3179_v31 = vld [vmem:[#allocation8 + $0x88] sm:$0xff]  ;;  %v852_v12 = vor.u32 %v850_v53, %v849_v59 }
  0x5e   : > { %586 = vmatmul.bf16.vlgmr.msra.gmra.mxu1 %v2624_v32  ;;  %2231 = vmatpush.bf16.msrb.mxu0 %v3185_v60  ;;  %v3227_v9 = vld [vmem:[#allocation8 + $0x208] sm:$0xff] }
  0x5f   : > { %2260 = vmatpush.bf16.msrb.mxu1 %v3193_v2 }
  0x60   : > { %2205 = vmatpush.bf16.msra.mxu3 %v3174_v61  ;;  %v1030_v13 = vld [vmem:[#allocation2 + $0x24] sm:$0x8] }
  0x61   : > { %2178 = vmatpush.bf16.msrb.mxu2 %v3164_v24  ;;  %v1058_v24 = vshrl.u32 %v1030_v13, 16  ;;  %v827_v27 = vld [vmem:[#allocation2 + $0x24] sm:$0x8]  ;;  %v829_v43 = vld [vmem:[#allocation2 + $0x34] sm:$0x8] }
  0x62   : > { %2232 = vmatpush.bf16.msrb.mxu0 %v3184_v63  ;;  %v957_v63 = vrot.slane %v850_v53, 5  ;;  %v795_v53 = vld [vmem:[#allocation2 + $0x5c] sm:$0x1] }
  0x63   : > { %2261 = vmatpush.bf16.msrb.mxu1 %v3192_v6  ;;  %v855_v6 = vshrl.u32 %v825_v58, 16  ;;  %v3828_v42 = vrot.slane %v1058_v24, 11  ;;  %v948_v51 = vld [vmem:[#allocation2 + $0x3c] sm:$0x1] }
  0x64   : > { %2206 = vmatpush.bf16.msra.mxu3 %v3173_v0  ;;  %v1028_v0 = vld [vmem:[#allocation2 + $0x14] sm:$0x8]  ;;  %v958_v15 = vor.u32 %v957_v63, %v956_v62  ;;  %v3200_v63 = vld [vmem:[#allocation8 + $0x130] sm:$0xff] }
  0x65   : > { %2179 = vmatpush.bf16.msrb.mxu2 %v3163_v29  ;;  %v1045_v17 = vshrl.u32 %v1028_v0, 16 }
  0x66   : > { %2233 = vmatpush.bf16.msrb.mxu0 %v3183_v3  ;;  %v945_v3 = vld [vmem:[#allocation2 + $0xc] sm:$0x1] }
  0x67   : > { %2749 = vmatmul.msk.bf16.vlgmr.msrb.gmra.mxu3 %vm536_vm0, %v2624_v32  ;;  %2262 = vmatpush.bf16.msrb.mxu1 %v3191_v14  ;;  %v786_v32 = vld [vmem:[#allocation2 + $0x2c] sm:$0x1]  ;;  %v961_v16 = vshll.u32 %v945_v3, 16 }
  0x68   : > { %2207 = vmatpush.bf16.msra.mxu3 %v3172_v4  ;;  %v787_v37 = vsel %vm3780_vm6, 0, %v786_v32  ;;  %v768_v4 = vld [vmem:[#allocation2 + $0x44] sm:$0x8]  ;;  %v792_v14 = vld [vmem:[#allocation2 + $0x4c] sm:$0x1] }
  0x69   : > { %2180 = vmatpush.bf16.msrb.mxu2 %v3162_v34  ;;  %788 = vst [vmem:[#allocation2 + $0x2c] sm:$0x1] %v787_v37  ;;  %v769_v8 = vsel %vm3771_vm3, 0, %v768_v4  ;;  %v793_v18 = vsel %vm3780_vm6, 0, %v792_v14  ;;  %v959_v34 = vrot.slane %v958_v15, 4  ;;  %v796_v14 = vsel %vm3780_vm6, 0, %v795_v53 }
  0x6a   : > { %2234 = vmatpush.bf16.msrb.mxu0 %v3182_v7  ;;  %v946_v7 = vld [vmem:[#allocation2 + $0x1c] sm:$0x1]  ;;  %770 = vst [vmem:[#allocation2 + $0x44] sm:$0x8] %v769_v8 }
  0x6b   : > { %2263 = vmatpush.bf16.msrb.mxu1 %v3190_v25  ;;  %v970_v23 = vshll.u32 %v946_v7, 16  ;;  %794 = vst [vmem:[#allocation2 + $0x4c] sm:$0x1] %v793_v18 }
  0x6c   : > { %2208 = vmatpush.bf16.msra.mxu3 %v3171_v11  ;;  %797 = vst [vmem:[#allocation2 + $0x5c] sm:$0x1] %v796_v14 }
  0x6d   : > { %562 = vmatmul.bf16.gmra.mxu0 %v2632_v40  ;;  %2289 = vmatpush.bf16.msra.mxu2 %v3201_v22  ;;  %v3824_v39 = vrot.slane %v970_v23, 5 }
  0x6e   : > { %591 = vmatmul.bf16.gmra.mxu1 %v2636_v41  ;;  %2235 = vmatpush.bf16.msrb.mxu0 %v3181_v19 }
  0x6f   : > { %2264 = vmatpush.bf16.msrb.mxu1 %v3189_v30 }
  0x70   : > { %2209 = vmatpush.bf16.msra.mxu3 %v3170_v21  ;;  %v947_v28 = vld [vmem:[#allocation2 + $0x2c] sm:$0x1] }
  0x71   : > { %v979_v46 = vshll.u32 %v947_v28, 16  ;;  %2290 = vmatpush.bf16.msra.mxu2 %v3200_v63 }
  0x72   : > { %2236 = vmatpush.bf16.msrb.mxu0 %v3180_v26 }
  0x73   : > { %2265 = vmatpush.bf16.msrb.mxu1 %v3188_v35  ;;  %v963_v35 = vrot.slane %v961_v16, 5  ;;  %v3842_v3 = vrot.slane %v979_v46, 5 }
  0x76   : > { %2237 = vmatpush.bf16.msrb.mxu0 %v3179_v31  ;;  %v2779_v31 = vld [vmem:[#allocation2 + $0x8] sm:$0xf] }
  0x77   : > { %2750 = vmatmul.msk.bf16.gmra.mxu3 %vm536_vm0, %v2636_v41  ;;  %2266 = vmatpush.bf16.msrb.mxu1 %v3187_v38 }
  0x7a   : > { %2238 = vmatpush.bf16.msrb.mxu0 %v3178_v36 }
  0x7b   : > { %2267 = vmatpush.bf16.msrb.mxu1 %v3186_v52  ;;  %v1032_v52 = vld [vmem:[#allocation2 + $0x34] sm:$0x8] }
  0x7c   : > { %v1071_v13 = vshrl.u32 %v1032_v52, 16 }
  0x7d   : > { %567 = vmatmul.bf16.gmra.mxu0 %v2644_v49 }
  0x7e   : > { %596 = vmatmul.bf16.gmra.mxu1 %v2648_v50  ;;  %v3861_v46 = vrot.slane %v1071_v13, 11 }
  0x87   : > { %2751 = vmatmul.msk.bf16.gmra.mxu3 %vm536_vm0, %v2648_v50  ;;  %v823_v50 = vld [vmem:[#allocation2 + $0x4] sm:$0x8] }
  0x8d   : > { %572 = vmatmul.bf16.gmra.mxu0 %v2656_v55 }
  0x8e   : > { %601 = vmatmul.bf16.gmra.mxu1 %v2660_v56 }
  0x97   : > { %2752 = vmatmul.msk.bf16.gmra.mxu3 %vm536_vm0, %v2660_v56  ;;  %v842_v56 = vshrl.u32 %v823_v50, 16 }
  0x99   : > { %v2753_v5 = vrot.slane %v842_v56, 11 }
  0x9b   : > { %v853_v32 = vsel %vm3809_vm8, %v2753_v5, %v852_v12  ;;  %v988_v12 = vshll.u32 %v948_v51, 16 }
  0x9c   : > { %v3832_v56 = vunpack.c.l.b16 %v853_v32 }
  0xc9   : > { %v616_v33 = vpop.f32.mrf.mxu2 }
  0xd1   : > { %v618_v55 = vpop.f32.mrf.mxu2 }
  0xd9   : > { %v621_v26 = vpop.f32.mrf.mxu2 }
  0xda   : > { %v558_v40 = vpop.f32.mrf.mxu0 }
  0xdb   : > { %v587_v41 = vpop.f32.mrf.mxu1 }
  0xdc   : > { %v588_v44 = vadd.f32 %v587_v41, %v558_v40  ;;  %v3826_v40 = vrot.slane %v1045_v17, 11  ;;  %v771_v41 = vld [vmem:[#allocation2 + $0x54] sm:$0x8] }
  0xdd   : > { %v772_v48 = vsel %vm3771_vm3, 0, %v771_v41 }
  0xde   : > { %v617_v49 = vadd.f32 %v616_v33, %v588_v44  ;;  %v3816_v33 = vrot.slane %v855_v6, 11  ;;  %v868_v44 = vshrl.u32 %v827_v27, 16  ;;  %773 = vst [vmem:[#allocation2 + $0x54] sm:$0x8] %v772_v48  ;;  %v3209_v27 = vld [vmem:[#allocation8 + $0x178] sm:$0xff] }
  0xdf   : > { %2318 = vmatpush.bf16.msrb.mxu3 %v3209_v27 }
  0xe0   : > { %v637_v54 = vmul.f32 %v3794_v45, %v617_v49 }
  0xe1   : > { %v623_v22 = vpop.f32.mrf.mxu2 }
  0xe2   : > { %v646_v57 = vadd.f32 %v3796_v47, %v637_v54  ;;  %v560_v60 = vpop.f32.mrf.mxu0 }
  0xe3   : > { %v589_v61 = vpop.f32.mrf.mxu1 }
  0xe4   : > { %v654_v1 = vmax.f32 %v646_v57, 0.0  ;;  %v590_v2 = vadd.f32 %v589_v61, %v560_v60  ;;  %v964_v57 = vsel %vm3820_vm11, %v959_v34, %v963_v35  ;;  %v831_v35 = vld [vmem:[#allocation2 + $0x44] sm:$0x8] }
  0xe5   : > { %v1469_v23 = vunpack.c.l.b16 %v964_v57  ;;  %v894_v57 = vshrl.u32 %v831_v35, 16 }
  0xe6   : > { %v807_v10 = vpack.c.bf16 %v654_v1, %v654_v1  ;;  %v619_v11 = vadd.f32 %v618_v55, %v590_v2  ;;  %v3840_v1 = vrot.slane %v868_v44, 11  ;;  %v881_v2 = vshrl.u32 %v829_v43, 16 }
  0xe7   : > { %v3859_v44 = vrot.slane %v988_v12, 5  ;;  %v3882_v14 = vrot.slane %v894_v57, 11  ;;  %v3197_v57 = vld [vmem:[#allocation8 + $0x118] sm:$0xff] }
  0xe8   : > { %815 = vst [vmem:[#allocation2 + $0x18] sm:$0xf] %v807_v10  ;;  %v638_v19 = vmul.f32 %v3794_v45, %v619_v11 }
  0xea   : > { %v647_v25 = vadd.f32 %v3796_v47, %v638_v19  ;;  %v563_v29 = vpop.f32.mrf.mxu0  ;;  %v774_v19 = vld [vmem:[#allocation2 + $0x64] sm:$0x8] }
  0xeb   : > { %v592_v30 = vpop.f32.mrf.mxu1  ;;  %v775_v28 = vsel %vm3771_vm3, 0, %v774_v19 }
  0xec   : > { %v655_v36 = vmax.f32 %v647_v25, 0.0  ;;  %v593_v37 = vadd.f32 %v592_v30, %v563_v29  ;;  %v3850_v25 = vrot.slane %v881_v2, 11  ;;  %776 = vst [vmem:[#allocation2 + $0x64] sm:$0x8] %v775_v28 }
  0xee   : > { %v808_v49 = vpack.c.bf16 %v655_v36, %v655_v36  ;;  %v622_v50 = vadd.f32 %v621_v26, %v593_v37  ;;  %v1034_v26 = vld [vmem:[#allocation2 + $0x44] sm:$0x8] }
  0xef   : > { %v3150_v54 = vld [vmem:[#allocation2 + $0x14] sm:$0xf0]  ;;  %v1084_v51 = vshrl.u32 %v1034_v26, 16 }
  0xf0   : > { %v826_v55 = vld [vmem:[#allocation2 + $0x18] sm:$0xf]  ;;  %816 = vst [vmem:[#allocation2 + $0x28] sm:$0xf] %v808_v49  ;;  %v639_v59 = vmul.f32 %v3794_v45, %v622_v50  ;;  %v2780_v60 = vor.u32 %v3150_v54, %v2779_v31  ;;  %v626_v31 = vpop.f32.mrf.mxu3 }
  0xf1   : > { %v3836_v58 = vld [vmem:[#allocation2 + $0x18] sm:$0xf]  ;;  %v860_v61 = vshrl.u32 %v826_v55, 16  ;;  %v863_v62 = vshll.u32 %v826_v55, 16  ;;  %v3208_v55 = vld [vmem:[#allocation8 + $0x170] sm:$0xff]  ;;  %v3880_v13 = vrot.slane %v1084_v51, 11 }
  0xf2   : > { %v1050_v0 = vshrl.u32 %v3836_v58, 16  ;;  %v648_v4 = vadd.f32 %v3796_v47, %v639_v59  ;;  %2210 = vmatmul.bf16.vlgmr.msra.gmra.mxu3 %v2780_v60  ;;  %v565_v8 = vpop.f32.mrf.mxu0  ;;  %v1053_v24 = vshll.u32 %v3836_v58, 16  ;;  %v3199_v50 = vld [vmem:[#allocation8 + $0x128] sm:$0xff]  ;;  %v3206_v51 = vld [vmem:[#allocation8 + $0x160] sm:$0xff] }
  0xf3   : > { %v862_v5 = vrot.slane %v860_v61, 7  ;;  %v965_v6 = vrot.slane %v860_v61, 4  ;;  %v966_v7 = vrot.slane %v863_v62, 5  ;;  %v594_v10 = vpop.f32.mrf.mxu1  ;;  %2291 = vmatpush.bf16.msra.mxu2 %v3199_v50  ;;  %2319 = vmatpush.bf16.msrb.mxu3 %v3208_v55  ;;  %v3217_v50 = vld [vmem:[#allocation8 + $0x1b8] sm:$0xff]  ;;  %v3215_v58 = vld [vmem:[#allocation8 + $0x1a8] sm:$0xff] }
  0xf4   : > { %v1052_v11 = vrot.slane %v1050_v0, 7  ;;  %v656_v15 = vmax.f32 %v648_v4, 0.0  ;;  %v595_v16 = vadd.f32 %v594_v10, %v565_v8  ;;  %v3878_v12 = vrot.slane %v1053_v24, 5  ;;  %2347 = vmatpush.bf16.msra.mxu0 %v3217_v50  ;;  %v798_v50 = vld [vmem:[#allocation2 + $0x6c] sm:$0x1] }
  0xf5   : > { %v865_v17 = vor.u32 %v863_v62, %v862_v5  ;;  %v967_v18 = vor.u32 %v966_v7, %v965_v6 }
  0xf6   : > { %v809_v29 = vpack.c.bf16 %v656_v15, %v656_v15  ;;  %v624_v30 = vadd.f32 %v623_v22, %v595_v16  ;;  %v1055_v41 = vor.u32 %v1053_v24, %v1052_v11  ;;  %v3207_v15 = vld [vmem:[#allocation8 + $0x168] sm:$0xff] }
  0xf7   : > { %v866_v32 = vsel %vm3809_vm8, %v3816_v33, %v865_v17  ;;  %v968_v34 = vrot.slane %v967_v18, 4  ;;  %v3857_v37 = vld [vmem:[#allocation2 + $0x28] sm:$0xf]  ;;  %2320 = vmatpush.bf16.msrb.mxu3 %v3207_v15 }
  0xf8   : > { %v1430_v36 = vunpack.c.l.b16 %v866_v32  ;;  %v828_v43 = vld [vmem:[#allocation2 + $0x28] sm:$0xf]  ;;  %817 = vst [vmem:[#allocation2 + $0x38] sm:$0xf] %v809_v29  ;;  %v640_v48 = vmul.f32 %v3794_v45, %v624_v30  ;;  %v1063_v49 = vshrl.u32 %v3857_v37, 16  ;;  %v1066_v61 = vshll.u32 %v3857_v37, 16 }
  0xf9   : > { %v973_v33 = vsel %vm3820_vm11, %v968_v34, %v3824_v39  ;;  %v873_v54 = vshrl.u32 %v828_v43, 16  ;;  %v876_v62 = vshll.u32 %v828_v43, 16  ;;  %v949_v39 = vld [vmem:[#allocation2 + $0x4c] sm:$0x1]  ;;  %v2783_v18 = vld [vmem:[#allocation2 + $0x28] sm:$0xf]  ;;  %v628_v34 = vpop.f32.mrf.mxu3 }
  0xfa   : > { %v1437_v52 = vpack.c.b16 %v1430_v36, %v3832_v56  ;;  %v1470_v53 = vunpack.c.l.b16 %v973_v33  ;;  %v649_v59 = vadd.f32 %v3796_v47, %v640_v48  ;;  %v1065_v60 = vrot.slane %v1063_v49, 7  ;;  %v568_v63 = vpop.f32.mrf.mxu0 }
  0xfb   : > { %v597_v2 = vpop.f32.mrf.mxu1  ;;  %v1056_v56 = vsel %vm3809_vm8, %v3826_v40, %v1055_v41  ;;  %v875_v5 = vrot.slane %v873_v54, 7  ;;  %v974_v6 = vrot.slane %v873_v54, 4  ;;  %v975_v11 = vrot.slane %v876_v62, 5  ;;  %v3198_v41 = vld [vmem:[#allocation8 + $0x120] sm:$0xff]  ;;  %2321 = vmatpush.bf16.msrb.mxu3 %v3206_v51 }
  0xfc   : > { %2181 = vmatmul.bf16.vlgmr.msrb.gmra.mxu2 %v1437_v52  ;;  %v1477_v4 = vpack.c.b16 %v1470_v53, %v1469_v23  ;;  %v657_v7 = vmax.f32 %v649_v59, 0.0  ;;  %v598_v8 = vadd.f32 %v597_v2, %v568_v63  ;;  %v1068_v10 = vor.u32 %v1066_v61, %v1065_v60  ;;  %v833_v23 = vld [vmem:[#allocation2 + $0x54] sm:$0x8] }
  0xfd   : > { %v997_v16 = vshll.u32 %v949_v39, 16  ;;  %v976_v22 = vor.u32 %v975_v11, %v974_v6  ;;  %v1485_v27 = vunpack.c.l.b16 %v1056_v56  ;;  %v878_v29 = vor.u32 %v876_v62, %v875_v5  ;;  %2292 = vmatpush.bf16.msra.mxu2 %v3198_v41  ;;  %v3225_v56 = vld [vmem:[#allocation8 + $0x1f8] sm:$0xff] }
  0xfe   : > { %2239 = vmatmul.bf16.vlgmr.msrb.gmra.mxu0 %v1477_v4  ;;  %v810_v17 = vpack.c.bf16 %v657_v7, %v657_v7  ;;  %v627_v40 = vadd.f32 %v626_v31, %v598_v8  ;;  %v1069_v19 = vsel %vm3809_vm8, %v3828_v42, %v1068_v10  ;;  %v907_v33 = vshrl.u32 %v833_v23, 16  ;;  %v3216_v4 = vld [vmem:[#allocation8 + $0x1b0] sm:$0xff]  ;;  %v3900_v10 = vld [vmem:[#allocation2 + $0x5c] sm:$0x1]  ;;  %v3205_v11 = vld [vmem:[#allocation8 + $0x158] sm:$0xff]  ;;  %2376 = vmatpush.bf16.msra.mxu1 %v3225_v56 }
  0xff   : > { %v3151_v26 = vld [vmem:[#allocation2 + $0x34] sm:$0xf0]  ;;  %v1486_v28 = vunpack.c.l.b16 %v1069_v19  ;;  %v977_v42 = vrot.slane %v976_v22, 4  ;;  %v879_v62 = vsel %vm3809_vm8, %v3840_v1, %v878_v29  ;;  %v3898_v2 = vrot.slane %v997_v16, 5  ;;  %2348 = vmatpush.bf16.msra.mxu0 %v3216_v4  ;;  %2322 = vmatpush.bf16.msrb.mxu3 %v3205_v11 }
 0x100   : > { %v830_v24 = vld [vmem:[#allocation2 + $0x38] sm:$0xf]  ;;  %818 = vst [vmem:[#allocation2 + $0x48] sm:$0xf] %v810_v17  ;;  %v641_v32 = vmul.f32 %v3794_v45, %v627_v40  ;;  %v2784_v31 = vor.u32 %v3151_v26, %v2783_v18  ;;  %v3909_v16 = vrot.slane %v907_v33, 11  ;;  %v3224_v17 = vld [vmem:[#allocation8 + $0x1f0] sm:$0xff]  ;;  %v1431_v26 = vunpack.c.l.b16 %v879_v62 }
 0x101   : > { %v3887_v30 = vld [vmem:[#allocation2 + $0x38] sm:$0xf]  ;;  %v886_v35 = vshrl.u32 %v830_v24, 16  ;;  %v889_v36 = vshll.u32 %v830_v24, 16  ;;  %v1493_v43 = vpack.c.b16 %v1486_v28, %v1485_v27  ;;  %v982_v1 = vsel %vm3820_vm11, %v977_v42, %v3842_v3  ;;  %2293 = vmatpush.bf16.msra.mxu2 %v3197_v57  ;;  %v3196_v3 = vld [vmem:[#allocation8 + $0x110] sm:$0xff]  ;;  %v631_v51 = vpop.f32.mrf.mxu3 }
 0x102   : > { %v1076_v48 = vshrl.u32 %v3887_v30, 16  ;;  %v650_v52 = vadd.f32 %v3796_v47, %v641_v32  ;;  %2215 = vmatmul.bf16.gmra.mxu3 %v2784_v31  ;;  %v570_v59 = vpop.f32.mrf.mxu0  ;;  %v1079_v63 = vshll.u32 %v3887_v30, 16  ;;  %v3913_v40 = vrot.slane %v1050_v0, 4  ;;  %v3204_v31 = vld [vmem:[#allocation8 + $0x150] sm:$0xff]  ;;  %v3933_v33 = vld [vmem:[#allocation2 + $0x54] sm:$0x8]  ;;  %2377 = vmatpush.bf16.msra.mxu1 %v3224_v17 }
 0x103   : > { %v888_v53 = vrot.slane %v886_v35, 7  ;;  %v983_v54 = vrot.slane %v886_v35, 4  ;;  %v984_v55 = vrot.slane %v889_v36, 5  ;;  %v599_v60 = vpop.f32.mrf.mxu1  ;;  %2268 = vmatmul.bf16.vlgmr.msrb.gmra.mxu1 %v1493_v43  ;;  %v1006_v29 = vshll.u32 %v3900_v10, 16  ;;  %v777_v35 = vld [vmem:[#allocation2 + $0x74] sm:$0x8]  ;;  %2349 = vmatpush.bf16.msra.mxu0 %v3215_v58 }
 0x104   : > { %v1078_v39 = vrot.slane %v1076_v48, 7  ;;  %v658_v5 = vmax.f32 %v650_v52, 0.0  ;;  %v600_v6 = vadd.f32 %v599_v60, %v570_v59  ;;  %v1471_v32 = vunpack.c.l.b16 %v982_v1  ;;  %v3195_v56 = vld [vmem:[#allocation8 + $0x108] sm:$0xff]  ;;  %2323 = vmatpush.bf16.msrb.mxu3 %v3204_v31 }
 0x105   : > { %v891_v7 = vor.u32 %v889_v36, %v888_v53  ;;  %v985_v8 = vor.u32 %v984_v55, %v983_v54  ;;  %2294 = vmatpush.bf16.msra.mxu2 %v3196_v3  ;;  %v801_v55 = vld [vmem:[#allocation2 + $0x7c] sm:$0x1]  ;;  %v778_v4 = vsel %vm3771_vm3, 0, %v777_v35  ;;  %v3944_v1 = vrot.slane %v1006_v29, 5  ;;  %v3213_v29 = vld [vmem:[#allocation8 + $0x198] sm:$0xff] }
 0x106   : > { %v3907_v15 = vor.u32 %v1079_v63, %v1078_v39  ;;  %v811_v18 = vpack.c.bf16 %v658_v5, %v658_v5  ;;  %v629_v19 = vadd.f32 %v628_v34, %v600_v6  ;;  %v3214_v39 = vld [vmem:[#allocation8 + $0x1a0] sm:$0xff]  ;;  %v3223_v5 = vld [vmem:[#allocation8 + $0x1e8] sm:$0xff]  ;;  %779 = vst [vmem:[#allocation2 + $0x74] sm:$0x8] %v778_v4  ;;  %v799_v17 = vsel %vm3780_vm6, 0, %v798_v50 }
 0x107   : > { %v892_v22 = vsel %vm3809_vm8, %v3850_v25, %v891_v7  ;;  %v986_v23 = vrot.slane %v985_v8, 4  ;;  %v3918_v28 = vld [vmem:[#allocation2 + $0x48] sm:$0xf]  ;;  %v3203_v11 = vld [vmem:[#allocation8 + $0x148] sm:$0xff]  ;;  %2378 = vmatpush.bf16.msra.mxu1 %v3223_v5  ;;  %2350 = vmatpush.bf16.msra.mxu0 %v3214_v39  ;;  %800 = vst [vmem:[#allocation2 + $0x6c] sm:$0x1] %v799_v17 }
 0x108   : > { %v1432_v27 = vunpack.c.l.b16 %v892_v22  ;;  %v3920_v24 = vld [vmem:[#allocation2 + $0x48] sm:$0xf]  ;;  %819 = vst [vmem:[#allocation2 + $0x58] sm:$0xf] %v811_v18  ;;  %v642_v0 = vmul.f32 %v3794_v45, %v629_v19  ;;  %v1089_v34 = vshrl.u32 %v3918_v28, 16  ;;  %v1082_v43 = vsel %vm3809_vm8, %v3861_v46, %v3907_v15  ;;  %v3222_v19 = vld [vmem:[#allocation8 + $0x1e0] sm:$0xff]  ;;  %2324 = vmatpush.bf16.msrb.mxu3 %v3203_v11 }
 0x109   : > { %v991_v25 = vsel %vm3820_vm11, %v986_v23, %v3859_v44  ;;  %v899_v42 = vshrl.u32 %v3920_v24, 16  ;;  %v1092_v53 = vshll.u32 %v3918_v28, 16  ;;  %v902_v54 = vshll.u32 %v3920_v24, 16  ;;  %v2787_v3 = vld [vmem:[#allocation2 + $0x48] sm:$0xf]  ;;  %2295 = vmatpush.bf16.msra.mxu2 %v3195_v56  ;;  %v3212_v56 = vld [vmem:[#allocation8 + $0x190] sm:$0xff]  ;;  %v633_v11 = vpop.f32.mrf.mxu3 }
 0x10a   : > { %v1438_v36 = vpack.c.b16 %v1432_v27, %v1431_v26  ;;  %v1472_v41 = vunpack.c.l.b16 %v991_v25  ;;  %v651_v44 = vadd.f32 %v3796_v47, %v642_v0  ;;  %v1091_v52 = vrot.slane %v1089_v34, 7  ;;  %v573_v57 = vpop.f32.mrf.mxu0  ;;  %v1038_v24 = vld [vmem:[#allocation2 + $0x64] sm:$0x8] }
 0x10b   : > { %v602_v46 = vpop.f32.mrf.mxu1  ;;  %v901_v60 = vrot.slane %v899_v42, 7  ;;  %v992_v62 = vrot.slane %v899_v42, 4  ;;  %v993_v10 = vrot.slane %v902_v54, 5  ;;  %v1097_v15 = vshrl.u32 %v3933_v33, 16  ;;  %2379 = vmatpush.bf16.msra.mxu1 %v3222_v19  ;;  %2351 = vmatpush.bf16.msra.mxu0 %v3213_v29  ;;  %v3194_v19 = vld [vmem:[#allocation8 + $0x100] sm:$0xff] }
 0x10c   : > { %2186 = vmatmul.bf16.gmra.mxu2 %v1438_v36  ;;  %v1478_v59 = vpack.c.b16 %v1472_v41, %v1471_v32  ;;  %v659_v6 = vmax.f32 %v651_v44, 0.0  ;;  %v603_v7 = vadd.f32 %v602_v46, %v573_v57  ;;  %v1094_v8 = vor.u32 %v1092_v53, %v1091_v52 }
 0x10d   : > { %v802_v18 = vsel %vm3780_vm6, 0, %v801_v55  ;;  %v994_v27 = vor.u32 %v993_v10, %v992_v62  ;;  %v1487_v0 = vunpack.c.l.b16 %v1082_v43  ;;  %v904_v31 = vor.u32 %v902_v54, %v901_v60  ;;  %v835_v10 = vld [vmem:[#allocation2 + $0x64] sm:$0x8]  ;;  %2296 = vmatpush.bf16.msra.mxu2 %v3194_v19 }
 0x10e   : > { %2244 = vmatmul.bf16.gmra.mxu0 %v1478_v59  ;;  %v812_v22 = vpack.c.bf16 %v659_v6, %v659_v6  ;;  %v632_v23 = vadd.f32 %v631_v51, %v603_v7  ;;  %v1095_v26 = vsel %vm3809_vm8, %v3880_v13, %v1094_v8  ;;  %v3202_v13 = vld [vmem:[#allocation8 + $0x140] sm:$0xff]  ;;  %v1110_v52 = vshrl.u32 %v1038_v24, 16  ;;  %803 = vst [vmem:[#allocation2 + $0x7c] sm:$0x1] %v802_v18 }
 0x10f   : > { %v3152_v58 = vld [vmem:[#allocation2 + $0x54] sm:$0xf0]  ;;  %v1488_v25 = vunpack.c.l.b16 %v1095_v26  ;;  %v995_v44 = vrot.slane %v994_v27, 4  ;;  %v905_v60 = vsel %vm3809_vm8, %v3882_v14, %v904_v31  ;;  %2325 = vmatpush.bf16.msrb.mxu3 %v3202_v13  ;;  %v2765_v17 = vrot.slane %v1097_v15, 11  ;;  %2352 = vmatpush.bf16.msra.mxu0 %v3212_v56 }
 0x110   : > { %v834_v32 = vld [vmem:[#allocation2 + $0x58] sm:$0xf]  ;;  %820 = vst [vmem:[#allocation2 + $0x68] sm:$0xf] %v812_v22  ;;  %v643_v36 = vmul.f32 %v3794_v45, %v632_v23  ;;  %v2788_v41 = vor.u32 %v3152_v58, %v2787_v3  ;;  %v3970_v18 = vrot.slane %v1110_v52, 11  ;;  %v3221_v22 = vld [vmem:[#allocation8 + $0x1d8] sm:$0xff]  ;;  %v1433_v24 = vunpack.c.l.b16 %v905_v60 }
 0x111   : > { %v3954_v35 = vld [vmem:[#allocation2 + $0x58] sm:$0xf]  ;;  %v912_v42 = vshrl.u32 %v834_v32, 16  ;;  %v915_v33 = vshll.u32 %v834_v32, 16  ;;  %v1494_v50 = vpack.c.b16 %v1488_v25, %v1487_v0  ;;  %v1000_v62 = vsel %vm3820_vm11, %v995_v44, %v3898_v2  ;;  %v837_v2 = vld [vmem:[#allocation2 + $0x74] sm:$0x8]  ;;  %2380 = vmatpush.bf16.msra.mxu1 %v3221_v22 }
 0x112   : > { %v1102_v51 = vshrl.u32 %v3954_v35, 16  ;;  %v652_v43 = vadd.f32 %v3796_v47, %v643_v36  ;;  %2220 = vmatmul.bf16.gmra.mxu3 %v2788_v41  ;;  %v575_v46 = vpop.f32.mrf.mxu0  ;;  %v1105_v4 = vshll.u32 %v3954_v35, 16  ;;  %v1473_v58 = vunpack.c.l.b16 %v1000_v62  ;;  %v3211_v32 = vld [vmem:[#allocation8 + $0x188] sm:$0xff]  ;;  %v951_v52 = vld [vmem:[#allocation2 + $0x6c] sm:$0x1]  ;;  %v3210_v62 = vld [vmem:[#allocation8 + $0x180] sm:$0xff] }
 0x113   : > { %v914_v54 = vrot.slane %v912_v42, 7  ;;  %v1001_v55 = vrot.slane %v912_v42, 4  ;;  %v1002_v57 = vrot.slane %v915_v33, 5  ;;  %v604_v59 = vpop.f32.mrf.mxu1  ;;  %2273 = vmatmul.bf16.gmra.mxu1 %v1494_v50  ;;  %v920_v25 = vshrl.u32 %v835_v10, 16  ;;  %v3220_v42 = vld [vmem:[#allocation8 + $0x1d0] sm:$0xff]  ;;  %2353 = vmatpush.bf16.msra.mxu0 %v3211_v32 }
 0x114   : > { %v1104_v39 = vrot.slane %v1102_v51, 7  ;;  %v660_v5 = vmax.f32 %v652_v43, 0.0  ;;  %v605_v6 = vadd.f32 %v604_v59, %v575_v46  ;;  %v933_v41 = vshrl.u32 %v837_v2, 16 }
 0x115   : > { %v917_v7 = vor.u32 %v915_v33, %v914_v54  ;;  %v1003_v8 = vor.u32 %v1002_v57, %v1001_v55  ;;  %v1148_v55 = vld [vmem:[#allocation2 + $0x1c] sm:$0x1]  ;;  %v1158_v60 = vor.u32 %v3878_v12, %v3913_v40  ;;  %2381 = vmatpush.bf16.msra.mxu1 %v3220_v42  ;;  %v1166_v10 = vrot.slane %v1066_v61, 5 }
 0x116   : > { %v1107_v14 = vor.u32 %v1105_v4, %v1104_v39  ;;  %v813_v23 = vpack.c.bf16 %v660_v5, %v660_v5  ;;  %v634_v3 = vadd.f32 %v633_v11, %v605_v6  ;;  %v3233_v39 = vld [vmem:[#allocation8 + $0x238] sm:$0xff]  ;;  %v952_v5 = vld [vmem:[#allocation2 + $0x7c] sm:$0x1]  ;;  %v1161_v12 = vshll.u32 %v1148_v55, 16 }
 0x117   : > { %v918_v26 = vsel %vm3809_vm8, %v3909_v16, %v917_v7  ;;  %v1004_v27 = vrot.slane %v1003_v8, 4  ;;  %v3975_v0 = vld [vmem:[#allocation2 + $0x68] sm:$0xf]  ;;  %v1015_v7 = vshll.u32 %v951_v52, 16  ;;  %v3219_v8 = vld [vmem:[#allocation8 + $0x1c8] sm:$0xff]  ;;  %2405 = vmatpush.bf16.msrb.mxu2 %v3233_v39  ;;  %v2760_v22 = vrot.slane %v933_v41, 11  ;;  %2354 = vmatpush.bf16.msra.mxu0 %v3210_v62 }
 0x118   : > { %v1434_v29 = vunpack.c.l.b16 %v918_v26  ;;  %v836_v15 = vld [vmem:[#allocation2 + $0x68] sm:$0xf]  ;;  %821 = vst [vmem:[#allocation2 + $0x78] sm:$0xf] %v813_v23  ;;  %v644_v31 = vmul.f32 %v3794_v45, %v634_v3  ;;  %v1115_v16 = vshrl.u32 %v3975_v0, 16  ;;  %v1108_v50 = vsel %vm3809_vm8, %v2765_v17, %v1107_v14 }
 0x119   : > { %v1009_v36 = vsel %vm3820_vm11, %v1004_v27, %v3944_v1  ;;  %v925_v44 = vshrl.u32 %v836_v15, 16  ;;  %v1118_v54 = vshll.u32 %v3975_v0, 16  ;;  %v928_v1 = vshll.u32 %v836_v15, 16  ;;  %v1149_v14 = vld [vmem:[#allocation2 + $0x2c] sm:$0x1]  ;;  %2382 = vmatpush.bf16.msra.mxu1 %v3219_v8 }
 0x11a   : > { %v1439_v33 = vpack.c.b16 %v1434_v29, %v1433_v24  ;;  %v1474_v13 = vunpack.c.l.b16 %v1009_v36  ;;  %v653_v43 = vadd.f32 %v3796_v47, %v644_v31  ;;  %v1117_v45 = vrot.slane %v1115_v16, 7  ;;  %v2791_v2 = vld [vmem:[#allocation2 + $0x68] sm:$0xf]  ;;  %v780_v3 = vld [vmem:[#allocation2 + $0x84] sm:$0x8]  ;;  %v3218_v36 = vld [vmem:[#allocation8 + $0x1c0] sm:$0xff] }
 0x11b   : > { %v927_v46 = vrot.slane %v925_v44, 7  ;;  %v1010_v59 = vrot.slane %v925_v44, 4  ;;  %v1011_v6 = vrot.slane %v928_v1, 5  ;;  %v1489_v11 = vunpack.c.l.b16 %v1108_v50 }
 0x11c   : > { %2191 = vmatmul.bf16.gmra.mxu2 %v1439_v33  ;;  %v1479_v57 = vpack.c.b16 %v1474_v13, %v1473_v58  ;;  %v661_v56 = vmax.f32 %v653_v43, 0.0  ;;  %v1120_v47 = vor.u32 %v1118_v54, %v1117_v45  ;;  %v2759_v17 = vrot.slane %v920_v25, 11  ;;  %v1040_v13 = vld [vmem:[#allocation2 + $0x74] sm:$0x8] }
 0x11d   : > { %v1012_v23 = vor.u32 %v1011_v6, %v1010_v59  ;;  %v930_v29 = vor.u32 %v928_v1, %v927_v46  ;;  %v1024_v61 = vshll.u32 %v952_v5, 16  ;;  %v1159_v58 = vrot.slane %v1158_v60, 4  ;;  %2383 = vmatpush.bf16.msra.mxu1 %v3218_v36  ;;  %v1229_v36 = vld [vmem:[#allocation2 + $0x24] sm:$0x8] }
 0x11e   : > { %2249 = vmatmul.bf16.gmra.mxu0 %v1479_v57  ;;  %v814_v40 = vpack.c.bf16 %v661_v56, %v661_v56  ;;  %v1121_v19 = vsel %vm3809_vm8, %v3970_v18, %v1120_v47  ;;  %v1017_v31 = vrot.slane %v1015_v7, 5  ;;  %v1163_v18 = vrot.slane %v1161_v12, 5  ;;  %v3232_v47 = vld [vmem:[#allocation8 + $0x230] sm:$0xff] }
 0x11f   : > { %v3153_v26 = vld [vmem:[#allocation2 + $0x74] sm:$0xf0]  ;;  %v1490_v27 = vunpack.c.l.b16 %v1121_v19  ;;  %v1013_v33 = vrot.slane %v1012_v23, 4  ;;  %v1165_v41 = vrot.slane %v1063_v49, 4  ;;  %v1170_v43 = vshll.u32 %v1149_v14, 16  ;;  %2406 = vmatpush.bf16.msrb.mxu2 %v3232_v47 }
 0x120   : > { %v838_v24 = vld [vmem:[#allocation2 + $0x78] sm:$0xf]  ;;  %822 = vst [vmem:[#allocation2 + $0x88] sm:$0xf] %v814_v40  ;;  %v2792_v15 = vor.u32 %v3153_v26, %v2791_v2  ;;  %v931_v1 = vsel %vm3809_vm8, %v2759_v17, %v930_v29  ;;  %v781_v57 = vsel %vm3771_vm3, 0, %v780_v3  ;;  %v1026_v37 = vrot.slane %v1024_v61, 5 }
 0x121   : > { %v938_v25 = vshrl.u32 %v838_v24, 16  ;;  %v941_v32 = vshll.u32 %v838_v24, 16  ;;  %v1495_v42 = vpack.c.b16 %v1490_v27, %v1489_v11  ;;  %v3999_v45 = vld [vmem:[#allocation2 + $0x78] sm:$0xf]  ;;  %v1167_v55 = vor.u32 %v1166_v10, %v1165_v41  ;;  %782 = vst [vmem:[#allocation2 + $0x84] sm:$0x8] %v781_v57 }
 0x122   : > { %2225 = vmatmul.bf16.gmra.mxu3 %v2792_v15  ;;  %v1172_v49 = vrot.slane %v1170_v43, 5  ;;  %v1018_v60 = vsel %vm3820_vm11, %v1013_v33, %v1017_v31  ;;  %v1123_v39 = vshrl.u32 %v1040_v13, 16  ;;  %v1128_v56 = vshrl.u32 %v3999_v45, 16  ;;  %v4022_v23 = vld [vmem:[#allocation2 + $0x28] sm:$0xf]  ;;  %v3231_v33 = vld [vmem:[#allocation8 + $0x228] sm:$0xff] }
 0x123   : > { %v940_v50 = vrot.slane %v938_v25, 7  ;;  %v1019_v44 = vrot.slane %v938_v25, 4  ;;  %v1020_v52 = vrot.slane %v941_v32, 5  ;;  %2278 = vmatmul.bf16.gmra.mxu1 %v1495_v42  ;;  %v1168_v62 = vrot.slane %v1167_v55, 4  ;;  %v4029_v15 = vld [vmem:[#allocation2 + $0x38] sm:$0xf]  ;;  %2407 = vmatpush.bf16.msrb.mxu2 %v3231_v33 }
 0x124   : > { %v1435_v6 = vunpack.c.l.b16 %v931_v1  ;;  %v1164_v8 = vsel %vm3820_vm11, %v1159_v58, %v1163_v18  ;;  %v1130_v14 = vrot.slane %v1128_v56, 7  ;;  %v1131_v12 = vshll.u32 %v3999_v45, 16  ;;  %v1231_v58 = vld [vmem:[#allocation2 + $0x34] sm:$0x8]  ;;  %v1150_v47 = vld [vmem:[#allocation2 + $0x3c] sm:$0x1] }
 0x125   : > { %v943_v46 = vor.u32 %v941_v32, %v940_v50  ;;  %v1021_v59 = vor.u32 %v1020_v52, %v1019_v44  ;;  %v1173_v11 = vsel %vm3820_vm11, %v1168_v62, %v1172_v49  ;;  %v1475_v2 = vunpack.c.l.b16 %v1018_v60 }
 0x126   : > { %v2767_v19 = vrot.slane %v1123_v39, 11  ;;  %v1526_v27 = vunpack.c.l.b16 %v1173_v11  ;;  %v1133_v24 = vor.u32 %v1131_v12, %v1130_v14  ;;  %v1525_v32 = vunpack.c.l.b16 %v1164_v8 }
 0x127   : > { %v944_v5 = vsel %vm3809_vm8, %v2760_v22, %v943_v46  ;;  %v1022_v7 = vrot.slane %v1021_v59, 4  ;;  %v4014_v17 = vld [vmem:[#allocation2 + $0x88] sm:$0xf]  ;;  %v1251_v42 = vshrl.u32 %v4022_v23, 16  ;;  %v1259_v44 = vshrl.u32 %v1231_v58, 16 }
 0x128   : > { %v1436_v10 = vunpack.c.l.b16 %v944_v5  ;;  %v1141_v22 = vshrl.u32 %v4014_v17, 16  ;;  %v1144_v61 = vshll.u32 %v4014_v17, 16  ;;  %v1042_v31 = vld [vmem:[#allocation2 + $0x84] sm:$0x8]  ;;  %v1533_v13 = vpack.c.b16 %v1526_v27, %v1525_v32  ;;  %v2795_v32 = vld [vmem:[#allocation2 + $0x18] sm:$0xf] }
 0x129   : > { %v1027_v40 = vsel %vm3820_vm11, %v1022_v7, %v1026_v37  ;;  %v1136_v18 = vshrl.u32 %v1042_v31, 16  ;;  %v1134_v50 = vsel %vm3809_vm8, %v2767_v19, %v1133_v24  ;;  %v1264_v52 = vshrl.u32 %v4029_v15, 16  ;;  %v1151_v37 = vld [vmem:[#allocation2 + $0x4c] sm:$0x1]  ;;  %v4059_v19 = vld [vmem:[#allocation2 + $0x58] sm:$0xf] }
 0x12a   : > { %v1440_v3 = vpack.c.b16 %v1436_v10, %v1435_v6  ;;  %v1476_v26 = vunpack.c.l.b16 %v1027_v40  ;;  %v1143_v29 = vrot.slane %v1141_v22, 7  ;;  %v1246_v1 = vshrl.u32 %v1229_v36, 16  ;;  %v3159_v17 = vld [vmem:[#allocation2 + $0x54] sm:$0xf0] }
 0x12b   : > { %v2768_v43 = vrot.slane %v1136_v18, 11  ;;  %v1253_v55 = vrot.slane %v1251_v42, 7  ;;  %v1254_v57 = vshll.u32 %v4022_v23, 16  ;;  %v1266_v46 = vrot.slane %v1264_v52, 7 }
 0x12c   : > { %2196 = vmatmul.bf16.gmra.mxu2 %v1440_v3  ;;  %v1480_v25 = vpack.c.b16 %v1476_v26, %v1475_v2  ;;  %v1146_v41 = vor.u32 %v1144_v61, %v1143_v29  ;;  %v1267_v59 = vshll.u32 %v4029_v15, 16  ;;  %v1174_v49 = vrot.slane %v1076_v48, 4  ;;  %v3230_v3 = vld [vmem:[#allocation8 + $0x220] sm:$0xff]  ;;  %v3154_v26 = vld [vmem:[#allocation2 + $0x24] sm:$0xf0] }
 0x12d   : > { %v1175_v60 = vrot.slane %v1079_v63, 5  ;;  %v2770_v39 = vrot.slane %v1259_v44, 11  ;;  %v1183_v5 = vrot.slane %v1089_v34, 4  ;;  %v1184_v6 = vrot.slane %v1092_v53, 5  ;;  %2408 = vmatpush.bf16.msrb.mxu2 %v3230_v3  ;;  %v751_v3 = vld [vmem:[#allocation2 + $0x94] sm:$0x8] }
 0x12e   : > { %2254 = vmatmul.bf16.gmra.mxu0 %v1480_v25  ;;  %v1147_v62 = vsel %vm3809_vm8, %v2768_v43, %v1146_v41  ;;  %v1491_v7 = vunpack.c.l.b16 %v1134_v50  ;;  %v1269_v10 = vor.u32 %v1267_v59, %v1266_v46  ;;  %v2769_v48 = vrot.slane %v1246_v1, 11  ;;  %v4063_v25 = vld [vmem:[#allocation2 + $0x48] sm:$0xf]  ;;  %v1235_v41 = vld [vmem:[#allocation2 + $0x54] sm:$0x8] }
 0x12f   : > { %v1492_v8 = vunpack.c.l.b16 %v1147_v62  ;;  %v1256_v30 = vor.u32 %v1254_v57, %v1253_v55  ;;  %v1185_v63 = vor.u32 %v1184_v6, %v1183_v5  ;;  %v1188_v11 = vshll.u32 %v1151_v37, 16  ;;  %v1233_v43 = vld [vmem:[#allocation2 + $0x44] sm:$0x8]  ;;  %v3229_v1 = vld [vmem:[#allocation8 + $0x218] sm:$0xff] }
 0x130   : > { %v1176_v40 = vor.u32 %v1175_v60, %v1174_v49  ;;  %v1179_v2 = vshll.u32 %v1150_v47, 16  ;;  %v1270_v34 = vsel %vm3809_vm8, %v2770_v39, %v1269_v10  ;;  %v1290_v31 = vshrl.u32 %v4059_v19, 16  ;;  %v1153_v6 = vld [vmem:[#allocation2 + $0x6c] sm:$0x1] }
 0x131   : > { %v1496_v14 = vpack.c.b16 %v1492_v8, %v1491_v7  ;;  %v1186_v28 = vrot.slane %v1185_v63, 4  ;;  %v1190_v53 = vrot.slane %v1188_v11, 5  ;;  %v1257_v27 = vsel %vm3809_vm8, %v2769_v48, %v1256_v30  ;;  %2409 = vmatpush.bf16.msrb.mxu2 %v3229_v1  ;;  %v3158_v48 = vld [vmem:[#allocation2 + $0x34] sm:$0xf0]  ;;  %v1152_v63 = vld [vmem:[#allocation2 + $0x5c] sm:$0x1] }
 0x132   : > { %2326 = vmatmul.bf16.vlgmr.msrb.gmra.mxu3 %v1533_v13  ;;  %v1542_v24 = vunpack.c.l.b16 %v1270_v34  ;;  %v1177_v29 = vrot.slane %v1176_v40, 4  ;;  %v1181_v58 = vrot.slane %v1179_v2, 5  ;;  %v2796_v36 = vor.u32 %v3154_v26, %v2795_v32  ;;  %v2811_v40 = vld [vmem:[#allocation2 + $0x28] sm:$0xf] }
 0x133   : > { %2283 = vmatmul.bf16.gmra.mxu1 %v1496_v14  ;;  %v1541_v33 = vunpack.c.l.b16 %v1257_v27  ;;  %v1191_v18 = vsel %vm3820_vm11, %v1186_v28, %v1190_v53  ;;  %v1277_v13 = vshrl.u32 %v4063_v25, 16  ;;  %v1285_v46 = vshrl.u32 %v1235_v41, 16  ;;  %v3155_v32 = vld [vmem:[#allocation2 + $0x44] sm:$0xf0] }
 0x134   : > { %v1182_v44 = vsel %vm3820_vm11, %v1177_v29, %v1181_v58  ;;  %v1528_v55 = vunpack.c.l.b16 %v1191_v18  ;;  %v1292_v37 = vrot.slane %v1290_v31, 7  ;;  %v1202_v49 = vrot.slane %v1118_v54, 5  ;;  %v804_v54 = vld [vmem:[#allocation2 + $0x8c] sm:$0x1]  ;;  %v3228_v29 = vld [vmem:[#allocation8 + $0x210] sm:$0xff]  ;;  %v4095_v58 = vpop.f32.mrf.mxu3 }
 0x135   : > { %v1549_v50 = vpack.c.b16 %v1542_v24, %v1541_v33  ;;  %v1201_v60 = vrot.slane %v1115_v16, 4  ;;  %v1527_v62 = vunpack.c.l.b16 %v1182_v44  ;;  %v1272_v39 = vshrl.u32 %v1233_v43, 16  ;;  %v4093_v24 = vld [vmem:[#allocation2 + $0x78] sm:$0xf]  ;;  %2410 = vmatpush.bf16.msrb.mxu2 %v3228_v29  ;;  %v4131_v29 = vld [vmem:[#allocation2 + $0x88] sm:$0xf] }
 0x136   : > { %v1279_v47 = vrot.slane %v1277_v13, 7  ;;  %v1293_v5 = vshll.u32 %v4059_v19, 16  ;;  %v1193_v7 = vrot.slane %v1105_v4, 5  ;;  %v1192_v8 = vrot.slane %v1102_v51, 4  ;;  %v2799_v43 = vld [vmem:[#allocation2 + $0x38] sm:$0xf] }
 0x137   : > { %v1534_v10 = vpack.c.b16 %v1528_v55, %v1527_v62  ;;  %v1280_v0 = vshll.u32 %v4063_v25, 16  ;;  %v2772_v16 = vrot.slane %v1285_v46, 11  ;;  %v1203_v11 = vor.u32 %v1202_v49, %v1201_v60  ;;  %v1239_v49 = vld [vmem:[#allocation2 + $0x74] sm:$0x8] }
 0x138   : > { %v1295_v30 = vor.u32 %v1293_v5, %v1292_v37  ;;  %v1206_v14 = vshll.u32 %v1153_v6, 16  ;;  %v2771_v2 = vrot.slane %v1272_v39, 11  ;;  %v805_v35 = vsel %vm3780_vm6, 0, %v804_v54 }
 0x139   : > { %v1282_v4 = vor.u32 %v1280_v0, %v1279_v47  ;;  %v2812_v51 = vor.u32 %v3158_v48, %v2811_v40  ;;  %v1194_v34 = vor.u32 %v1193_v7, %v1192_v8  ;;  %v1197_v28 = vshll.u32 %v1152_v63, 16  ;;  %806 = vst [vmem:[#allocation2 + $0x8c] sm:$0x1] %v805_v35  ;;  %v1237_v47 = vld [vmem:[#allocation2 + $0x64] sm:$0x8]  ;;  %2411 = vmatpush.bf16.msrb.mxu2 %v3227_v9 }
 0x13a   : > { %v1296_v53 = vsel %vm3809_vm8, %v2772_v16, %v1295_v30  ;;  %v1204_v26 = vrot.slane %v1203_v11, 4  ;;  %v1208_v27 = vrot.slane %v1206_v14, 5  ;;  %v752_v44 = vsel %vm3771_vm3, 0, %v751_v3 }
 0x13b   : > { %v1544_v33 = vunpack.c.l.b16 %v1296_v53  ;;  %v1195_v18 = vrot.slane %v1194_v34, 4  ;;  %v1199_v41 = vrot.slane %v1197_v28, 5  ;;  %v1316_v1 = vshrl.u32 %v4093_v24, 16  ;;  %753 = vst [vmem:[#allocation2 + $0x94] sm:$0x8] %v752_v44 }
 0x13c   : > { %2297 = vmatmul.bf16.vlgmr.msra.gmra.mxu2 %v2796_v36  ;;  %v1283_v36 = vsel %vm3809_vm8, %v2771_v2, %v1282_v4  ;;  %v2800_v55 = vor.u32 %v3155_v32, %v2799_v43  ;;  %v1209_v37 = vsel %vm3820_vm11, %v1204_v26, %v1208_v27  ;;  %v1311_v7 = vshrl.u32 %v1239_v49, 16  ;;  %v2815_v53 = vld [vmem:[#allocation2 + $0x48] sm:$0xf]  ;;  %v755_v43 = vld [vmem:[#allocation2 + $0x9c] sm:$0x1] }
 0x13d   : > { %v1543_v46 = vunpack.c.l.b16 %v1283_v36  ;;  %v1200_v39 = vsel %vm3820_vm11, %v1195_v18, %v1199_v41  ;;  %v1530_v6 = vunpack.c.l.b16 %v1209_v37  ;;  %v1318_v8 = vrot.slane %v1316_v1, 7  ;;  %v3226_v18 = vld [vmem:[#allocation8 + $0x200] sm:$0xff]  ;;  %v3156_v41 = vld [vmem:[#allocation2 + $0x64] sm:$0xf0]  ;;  %v2803_v49 = vld [vmem:[#allocation2 + $0x58] sm:$0xf] }
 0x13e   : > { %2355 = vmatmul.bf16.vlgmr.msra.gmra.mxu0 %v1549_v50  ;;  %v4099_v50 = vld [vmem:[#allocation2 + $0x68] sm:$0xf]  ;;  %v1220_v54 = vrot.slane %v1144_v61, 5  ;;  %v1529_v48 = vunpack.c.l.b16 %v1200_v39  ;;  %v1298_v16 = vshrl.u32 %v1237_v47, 16  ;;  %v1319_v63 = vshll.u32 %v4093_v24, 16  ;;  %v4122_v61 = vpop.f32.mrf.mxu3  ;;  %2412 = vmatpush.bf16.msrb.mxu2 %v3226_v18 }
 0x13f   : > { %v1303_v60 = vshrl.u32 %v4099_v50, 16  ;;  %v1550_v62 = vpack.c.b16 %v1544_v33, %v1543_v46  ;;  %v1211_v14 = vrot.slane %v1131_v12, 5  ;;  %v1210_v40 = vrot.slane %v1128_v56, 4  ;;  %v4133_v33 = vld [vmem:[#allocation2 + $0x98] sm:$0xf] }
 0x140   : > { %v1155_v11 = vld [vmem:[#allocation2 + $0x8c] sm:$0x1]  ;;  %v1535_v2 = vpack.c.b16 %v1530_v6, %v1529_v48  ;;  %v2774_v4 = vrot.slane %v1311_v7, 11  ;;  %v1321_v35 = vor.u32 %v1319_v63, %v1318_v8  ;;  %v2773_v3 = vrot.slane %v1298_v16, 11 }
 0x141   : > { %v1305_v30 = vrot.slane %v1303_v60, 7  ;;  %v1224_v28 = vshll.u32 %v1155_v11, 16  ;;  %v2816_v56 = vor.u32 %v3159_v17, %v2815_v53  ;;  %v1212_v12 = vor.u32 %v1211_v14, %v1210_v40 }
 0x142   : > { %2331 = vmatmul.bf16.gmra.mxu3 %v1534_v10  ;;  %v1219_v10 = vrot.slane %v1141_v22, 4  ;;  %v1306_v22 = vshll.u32 %v4099_v50, 16  ;;  %v1322_v27 = vsel %vm3809_vm8, %v2774_v4, %v1321_v35  ;;  %v1329_v39 = vshrl.u32 %v4131_v29, 16  ;;  %v1243_v8 = vld [vmem:[#allocation2 + $0x94] sm:$0x8] }
 0x143   : > { %2384 = vmatmul.bf16.vlgmr.msra.gmra.mxu1 %v2812_v51  ;;  %v1154_v51 = vld [vmem:[#allocation2 + $0x7c] sm:$0x1]  ;;  %v1226_v36 = vrot.slane %v1224_v28, 5  ;;  %v1213_v46 = vrot.slane %v1212_v12, 4  ;;  %v1342_v47 = vshrl.u32 %v4133_v33, 16  ;;  %v2804_v9 = vor.u32 %v3156_v41, %v2803_v49 }
 0x144   : > { %v1221_v34 = vor.u32 %v1220_v54, %v1219_v10  ;;  %v1308_v45 = vor.u32 %v1306_v22, %v1305_v30  ;;  %v1215_v26 = vshll.u32 %v1154_v51, 16  ;;  %v756_v54 = vsel %vm3780_vm6, 0, %v755_v43  ;;  %v1350_v43 = vld [vmem:[#allocation2 + $0x3c] sm:$0x1]  ;;  %v1349_v49 = vld [vmem:[#allocation2 + $0x2c] sm:$0x1] }
 0x145   : > { %757 = vst [vmem:[#allocation2 + $0x9c] sm:$0x1] %v756_v54  ;;  %v1331_v14 = vrot.slane %v1329_v39, 7  ;;  %v1337_v40 = vshrl.u32 %v1243_v8, 16  ;;  %v1332_v17 = vshll.u32 %v4131_v29, 16  ;;  %v1345_v4 = vshll.u32 %v4133_v33, 16 }
 0x146   : > { %v1222_v32 = vrot.slane %v1221_v34, 4  ;;  %v1309_v44 = vsel %vm3809_vm8, %v2773_v3, %v1308_v45  ;;  %v1217_v37 = vrot.slane %v1215_v26, 5  ;;  %v4143_v10 = vpop.f32.mrf.mxu3  ;;  %v3160_v34 = vld [vmem:[#allocation2 + $0x74] sm:$0xf0]  ;;  %v2819_v45 = vld [vmem:[#allocation2 + $0x68] sm:$0xf] }
 0x147   : > { %v1545_v6 = vunpack.c.l.b16 %v1309_v44  ;;  %v1334_v28 = vor.u32 %v1332_v17, %v1331_v14  ;;  %v2776_v53 = vrot.slane %v1337_v40, 11  ;;  %v1367_v18 = vrot.slane %v1267_v59, 5  ;;  %v2823_v54 = vld [vmem:[#allocation2 + $0x88] sm:$0xf] }
 0x148   : > { %v1227_v7 = vsel %vm3820_vm11, %v1222_v32, %v1226_v36  ;;  %v1218_v16 = vsel %vm3820_vm11, %v1213_v46, %v1217_v37  ;;  %v3157_v32 = vld [vmem:[#allocation2 + $0x84] sm:$0xf0]  ;;  %v1366_v36 = vrot.slane %v1264_v52, 4  ;;  %v1357_v46 = vrot.slane %v1251_v42, 4 }
 0x149   : > { %v1532_v11 = vunpack.c.l.b16 %v1227_v7  ;;  %v1531_v20 = vunpack.c.l.b16 %v1218_v16  ;;  %v1358_v37 = vrot.slane %v1254_v57, 5  ;;  %v1362_v7 = vshll.u32 %v1349_v49, 16  ;;  %v1353_v49 = vld [vmem:[#allocation2 + $0x6c] sm:$0x1] }
 0x14a   : > { %v1384_v14 = vrot.slane %v1290_v31, 4  ;;  %v1385_v40 = vrot.slane %v1293_v5, 5 }
 0x14b   : > { %v1536_v51 = vpack.c.b16 %v1532_v11, %v1531_v20  ;;  %v1359_v52 = vor.u32 %v1358_v37, %v1357_v46  ;;  %v1364_v42 = vrot.slane %v1362_v7, 5  ;;  %v1352_v20 = vld [vmem:[#allocation2 + $0x5c] sm:$0x1]  ;;  %v1394_v46 = vrot.slane %v1306_v22, 5 }
 0x14c   : > { %2302 = vmatmul.bf16.gmra.mxu2 %v2800_v55  ;;  %v1546_v55 = vunpack.c.l.b16 %v1322_v27  ;;  %v1393_v37 = vrot.slane %v1303_v60, 4 }
 0x14d   : > { %v1360_v16 = vrot.slane %v1359_v52, 4  ;;  %v1398_v52 = vshll.u32 %v1353_v49, 16 }
 0x14e   : > { %2360 = vmatmul.bf16.gmra.mxu0 %v1550_v62  ;;  %v1241_v62 = vld [vmem:[#allocation2 + $0x84] sm:$0x8]  ;;  %v1551_v48 = vpack.c.b16 %v1546_v55, %v1545_v6  ;;  %v4157_v12 = vpop.f32.mrf.mxu3  ;;  %v2807_v55 = vld [vmem:[#allocation2 + $0x78] sm:$0xf] }
 0x14f   : > { %v1324_v30 = vshrl.u32 %v1241_v62, 16  ;;  %v2808_v21 = vor.u32 %v3157_v32, %v2807_v55  ;;  %v1368_v62 = vor.u32 %v1367_v18, %v1366_v36  ;;  %v1403_v18 = vrot.slane %v1319_v63, 5  ;;  %v1354_v55 = vld [vmem:[#allocation2 + $0x7c] sm:$0x1] }
 0x150   : > { %v1395_v63 = vor.u32 %v1394_v46, %v1393_v37 }
 0x151   : > { %v2775_v35 = vrot.slane %v1324_v30, 11  ;;  %v1369_v59 = vrot.slane %v1368_v62, 4  ;;  %v1365_v30 = vsel %vm3820_vm11, %v1360_v16, %v1364_v42 }
 0x152   : > { %2336 = vmatmul.bf16.gmra.mxu3 %v1535_v2  ;;  %v1344_v2 = vrot.slane %v1342_v47, 7 }
 0x153   : > { %2389 = vmatmul.bf16.gmra.mxu1 %v2816_v56  ;;  %v2820_v56 = vor.u32 %v3160_v34, %v2819_v45  ;;  %v1335_v26 = vsel %vm3809_vm8, %v2775_v35, %v1334_v28  ;;  %v1376_v34 = vrot.slane %v1280_v0, 5  ;;  %v1389_v45 = vshll.u32 %v1352_v20, 16 }
 0x154   : > { %v1347_v3 = vor.u32 %v1345_v4, %v1344_v2  ;;  %v1547_v41 = vunpack.c.l.b16 %v1335_v26  ;;  %v1581_v2 = vunpack.c.l.b16 %v1365_v30 }
 0x155   : > { %v1391_v5 = vrot.slane %v1389_v45, 5 }
 0x156   : > { %v1348_v27 = vsel %vm3809_vm8, %v2776_v53, %v1347_v3  ;;  %v4171_v15 = vpop.f32.mrf.mxu3  ;;  %v1351_v53 = vld [vmem:[#allocation2 + $0x4c] sm:$0x1]  ;;  %v1386_v3 = vor.u32 %v1385_v40, %v1384_v14  ;;  %v1356_v14 = vld [vmem:[#allocation2 + $0x9c] sm:$0x1] }
 0x157   : > { %v1548_v44 = vunpack.c.l.b16 %v1348_v27  ;;  %v1380_v31 = vshll.u32 %v1351_v53, 16 }
 0x158   : > { %v1387_v19 = vrot.slane %v1386_v3, 4 }
 0x159   : > { %v1552_v6 = vpack.c.b16 %v1548_v44, %v1547_v41  ;;  %v1382_v32 = vrot.slane %v1380_v31, 5  ;;  %v1402_v44 = vrot.slane %v1316_v1, 4 }
 0x15b   : > { %v1404_v62 = vor.u32 %v1403_v18, %v1402_v44 }
 0x15c   : > { %2307 = vmatmul.bf16.gmra.mxu2 %v2804_v9  ;;  %v1371_v9 = vshll.u32 %v1350_v43, 16 }
 0x15d   : > { %v1405_v24 = vrot.slane %v1404_v62, 4 }
 0x15e   : > { %2365 = vmatmul.bf16.gmra.mxu0 %v1551_v48  ;;  %v1373_v8 = vrot.slane %v1371_v9, 5  ;;  %v3161_v48 = vld [vmem:[#allocation2 + $0x94] sm:$0xf0]  ;;  %v4181_v35 = vpop.f32.mrf.mxu3  ;;  %v1407_v9 = vshll.u32 %v1354_v55, 16 }
 0x15f   : > { %v2824_v57 = vor.u32 %v3161_v48, %v2823_v54  ;;  %v1412_v54 = vrot.slane %v1332_v17, 5  ;;  %v1421_v48 = vrot.slane %v1345_v4, 5 }
 0x160   : > { %v1374_v23 = vsel %vm3820_vm11, %v1369_v59, %v1373_v8  ;;  %v1409_v1 = vrot.slane %v1407_v9, 5  ;;  %v1396_v59 = vrot.slane %v1395_v63, 4  ;;  %v1400_v8 = vrot.slane %v1398_v52, 5 }
 0x161   : > { %v1582_v11 = vunpack.c.l.b16 %v1374_v23  ;;  %v1411_v23 = vrot.slane %v1329_v39, 4 }
 0x162   : > { %2341 = vmatmul.bf16.gmra.mxu3 %v1536_v51  ;;  %v1375_v51 = vrot.slane %v1277_v13, 4  ;;  %v1392_v13 = vsel %vm3820_vm11, %v1387_v19, %v1391_v5  ;;  %v1410_v22 = vsel %vm3820_vm11, %v1405_v24, %v1409_v1  ;;  %v1401_v50 = vsel %vm3820_vm11, %v1396_v59, %v1400_v8 }
 0x163   : > { %2394 = vmatmul.bf16.gmra.mxu1 %v2820_v56  ;;  %v1589_v28 = vpack.c.b16 %v1582_v11, %v1581_v2  ;;  %v1584_v0 = vunpack.c.l.b16 %v1392_v13  ;;  %v1586_v60 = vunpack.c.l.b16 %v1410_v22  ;;  %v1585_v30 = vunpack.c.l.b16 %v1401_v50  ;;  %v1355_v11 = vld [vmem:[#allocation2 + $0x8c] sm:$0x1] }
 0x164   : > { %v1377_v56 = vor.u32 %v1376_v34, %v1375_v51  ;;  %v1413_v20 = vor.u32 %v1412_v54, %v1411_v23  ;;  %v1416_v51 = vshll.u32 %v1355_v11, 16  ;;  %v1425_v34 = vshll.u32 %v1356_v14, 16 }
 0x165   : > { %v1591_v40 = vpack.c.b16 %v1586_v60, %v1585_v30 }
 0x166   : > { %v1378_v27 = vrot.slane %v1377_v56, 4  ;;  %v4189_v36 = vpop.f32.mrf.mxu3  ;;  %v1414_v53 = vrot.slane %v1413_v20, 4  ;;  %v1418_v3 = vrot.slane %v1416_v51, 5  ;;  %v1427_v39 = vrot.slane %v1425_v34, 5 }
 0x168   : > { %v1383_v25 = vsel %vm3820_vm11, %v1378_v27, %v1382_v32  ;;  %v1419_v33 = vsel %vm3820_vm11, %v1414_v53, %v1418_v3 }
 0x169   : > { %v1583_v43 = vunpack.c.l.b16 %v1383_v25  ;;  %v1587_v31 = vunpack.c.l.b16 %v1419_v33 }
 0x16c   : > { %2312 = vmatmul.bf16.gmra.mxu2 %v2808_v21  ;;  %v1590_v21 = vpack.c.b16 %v1584_v0, %v1583_v43 }
 0x16e   : > { %2370 = vmatmul.bf16.gmra.mxu0 %v1552_v6  ;;  %v4205_v6 = vpop.f32.mrf.mxu3 }
 0x173   : > { %2399 = vmatmul.bf16.gmra.mxu1 %v2824_v57  ;;  %v1420_v57 = vrot.slane %v1342_v47, 4 }
 0x175   : > { %v1422_v17 = vor.u32 %v1421_v48, %v1420_v57 }
 0x176   : > { %v2211_v16 = vpop.f32.mrf.mxu3 }
 0x177   : > { %v1423_v29 = vrot.slane %v1422_v17, 4 }
 0x179   : > { %v1428_v47 = vsel %vm3820_vm11, %v1423_v29, %v1427_v39 }
 0x17a   : > { %v1588_v19 = vunpack.c.l.b16 %v1428_v47 }
 0x17b   : > { %v2240_v2 = vpop.f32.mrf.mxu0 }
 0x17c   : > { %2413 = vmatmul.bf16.vlgmr.msrb.gmra.mxu2 %v1589_v28  ;;  %v1592_v32 = vpack.c.b16 %v1588_v19, %v1587_v31 }
 0x17e   : > { %v2213_v45 = vpop.f32.mrf.mxu3 }
 0x17f   : > { %v4187_v26 = vpop.f32.mrf.mxu2 }
 0x180   : > { %v2269_v4 = vpop.f32.mrf.mxu1  ;;  %v2212_v30 = vadd.f32 %v2211_v16, %v4187_v26 }
 0x182   : > { %v2241_v14 = vadd.f32 %v2240_v2, %v2212_v30 }
 0x183   : > { %v2242_v56 = vpop.f32.mrf.mxu0 }
 0x184   : > { %v2270_v51 = vadd.f32 %v2269_v4, %v2241_v14 }
 0x186   : > { %v2216_v13 = vpop.f32.mrf.mxu3 }
 0x187   : > { %v4197_v41 = vpop.f32.mrf.mxu2 }
 0x188   : > { %v2271_v27 = vpop.f32.mrf.mxu1  ;;  %v2214_v17 = vadd.f32 %v2213_v45, %v4197_v41  ;;  %v4274_v41 = vld [vmem:[#allocation11 + $0x2] ss:$0 sm:$0xff] }
 0x18a   : > { %v2243_v3 = vadd.f32 %v2242_v56, %v2214_v17 }
 0x18b   : > { %v2245_v25 = vpop.f32.mrf.mxu0 }
 0x18c   : > { %2418 = vmatmul.bf16.gmra.mxu2 %v1590_v21  ;;  %v2272_v47 = vadd.f32 %v2271_v27, %v2243_v3  ;;  %v4278_v27 = vld [vmem:[#allocation11 + $0x5] ss:$0 sm:$0xff] }
 0x18e   : > { %v2218_v44 = vpop.f32.mrf.mxu3 }
 0x18f   : > { %v4207_v7 = vpop.f32.mrf.mxu2 }
 0x190   : > { %v2274_v18 = vpop.f32.mrf.mxu1  ;;  %v2217_v31 = vadd.f32 %v2216_v13, %v4207_v7 }
 0x192   : > { %v2246_v30 = vadd.f32 %v2245_v25, %v2217_v31 }
 0x193   : > { %v2247_v55 = vpop.f32.mrf.mxu0 }
 0x194   : > { %v2275_v7 = vadd.f32 %v2274_v18, %v2246_v30 }
 0x196   : > { %v4237_v38 = vpop.f32.mrf.mxu3 }
 0x197   : > { %v4217_v42 = vpop.f32.mrf.mxu2 }
 0x198   : > { %v4235_v46 = vpop.f32.mrf.mxu1  ;;  %v2219_v13 = vadd.f32 %v2218_v44, %v4217_v42 }
 0x19b   : > { %v4239_v21 = vpop.f32.mrf.mxu0 }
 0x19c   : > { %2423 = vmatmul.bf16.gmra.mxu2 %v1591_v40 }
 0x19e   : > { %v4243_v9 = vpop.f32.mrf.mxu3 }
 0x19f   : > { %v4223_v28 = vpop.f32.mrf.mxu2 }
 0x1a0   : > { %v4241_v49 = vpop.f32.mrf.mxu1 }
 0x1a3   : > { %v4245_v63 = vpop.f32.mrf.mxu0 }
 0x1a6   : > { %v4249_v1 = vpop.f32.mrf.mxu3 }
 0x1a7   : > { %v4229_v5 = vpop.f32.mrf.mxu2 }
 0x1a8   : > { %v4247_v24 = vpop.f32.mrf.mxu1 }
 0x1ab   : > { %v4251_v59 = vpop.f32.mrf.mxu0 }
 0x1ac   : > { %2428 = vmatmul.bf16.gmra.mxu2 %v1592_v32  ;;  %v4272_v32 = vld [vmem:[#allocation11 + $0x4] ss:$0 sm:$0xff] }
 0x1ad   : > { %v721_v42 = vmul.f32 %v4272_v32, %v4122_v61 }
 0x1ae   : > { %v4255_v50 = vpop.f32.mrf.mxu3 }
 0x1af   : > { %v4231_v0 = vpop.f32.mrf.mxu2 }
 0x1b0   : > { %v4253_v22 = vpop.f32.mrf.mxu1 }
 0x1b3   : > { %v4259_v54 = vpop.f32.mrf.mxu0 }
 0x1b6   : > { %v2327_v23 = vpop.f32.mrf.mxu3 }
 0x1b7   : > { %v4233_v43 = vpop.f32.mrf.mxu2 }
 0x1b8   : > { %v4261_v48 = vpop.f32.mrf.mxu1 }
 0x1bb   : > { %v2356_v11 = vpop.f32.mrf.mxu0 }
 0x1be   : > { %v2329_v34 = vpop.f32.mrf.mxu3 }
 0x1bf   : > { %v2298_v37 = vpop.f32.mrf.mxu2 }
 0x1c0   : > { %v2385_v40 = vpop.f32.mrf.mxu1  ;;  %v2299_v53 = vadd.f32 %v2298_v37, %v2270_v51  ;;  %v720_v37 = vmul.f32 %v4272_v32, %v4095_v58 }
 0x1c2   : > { %v2328_v39 = vadd.f32 %v2327_v23, %v2299_v53  ;;  %v4281_v23 = vld [vmem:[#allocation11 + $0x3] ss:$0 sm:$0xff]  ;;  %v729_v17 = vadd.f32 %v4278_v27, %v720_v37  ;;  %v2224_v37 = vadd.f32 %v4243_v9, %v4229_v5  ;;  %v723_v5 = vmul.f32 %v4272_v32, %v4157_v12 }
 0x1c3   : > { %v2358_v29 = vpop.f32.mrf.mxu0 }
 0x1c4   : > { %v2357_v26 = vadd.f32 %v2356_v11, %v2328_v39 }
 0x1c6   : > { %v2332_v2 = vpop.f32.mrf.mxu3  ;;  %v2386_v4 = vadd.f32 %v2385_v40, %v2357_v26 }
 0x1c7   : > { %v2300_v62 = vpop.f32.mrf.mxu2 }
 0x1c8   : > { %v2387_v19 = vpop.f32.mrf.mxu1  ;;  %v2301_v16 = vadd.f32 %v2300_v62, %v2272_v47 }
 0x1ca   : > { %v2330_v14 = vadd.f32 %v2329_v34, %v2301_v16  ;;  %v2248_v34 = vadd.f32 %v2247_v55, %v2219_v13 }
 0x1cb   : > { %v2361_v45 = vpop.f32.mrf.mxu0 }
 0x1cc   : > { %v2359_v11 = vadd.f32 %v2358_v29, %v2330_v14  ;;  %v2277_v29 = vadd.f32 %v4235_v46, %v2248_v34 }
 0x1ce   : > { %v2334_v58 = vpop.f32.mrf.mxu3  ;;  %v2388_v3 = vadd.f32 %v2387_v19, %v2359_v11 }
 0x1cf   : > { %v2303_v52 = vpop.f32.mrf.mxu2 }
 0x1d0   : > { %v2304_v25 = vadd.f32 %v2303_v52, %v2275_v7  ;;  %v2390_v51 = vpop.f32.mrf.mxu1  ;;  %v2222_v52 = vadd.f32 %v4237_v38, %v4223_v28 }
 0x1d2   : > { %v2333_v39 = vadd.f32 %v2332_v2, %v2304_v25  ;;  %v730_v2 = vadd.f32 %v4278_v27, %v721_v42  ;;  %v2251_v61 = vadd.f32 %v4239_v21, %v2222_v52 }
 0x1d3   : > { %v2363_v26 = vpop.f32.mrf.mxu0 }
 0x1d4   : > { %v2362_v55 = vadd.f32 %v2361_v45, %v2333_v39 }
 0x1d6   : > { %v2391_v28 = vadd.f32 %v2390_v51, %v2362_v55  ;;  %v2337_v14 = vpop.f32.mrf.mxu3  ;;  %v2229_v55 = vadd.f32 %v4255_v50, %v4233_v43 }
 0x1d7   : > { %v2305_v8 = vpop.f32.mrf.mxu2 }
 0x1d8   : > { %v2306_v16 = vadd.f32 %v2305_v8, %v2277_v29  ;;  %v2392_v30 = vpop.f32.mrf.mxu1  ;;  %v722_v8 = vmul.f32 %v4272_v32, %v4143_v10  ;;  %v2253_v10 = vadd.f32 %v4245_v63, %v2224_v37  ;;  %v732_v29 = vadd.f32 %v4278_v27, %v723_v5 }
 0x1da   : > { %v2335_v38 = vadd.f32 %v2334_v58, %v2306_v16  ;;  %v2227_v58 = vadd.f32 %v4249_v1, %v4231_v0  ;;  %v724_v1 = vmul.f32 %v4272_v32, %v4171_v15  ;;  %v2258_v15 = vadd.f32 %v4259_v54, %v2229_v55 }
 0x1db   : > { %v2366_v25 = vpop.f32.mrf.mxu0 }
 0x1dc   : > { %v2256_v12 = vadd.f32 %v4251_v59, %v2227_v58 }
 0x1df   : > { %v4257_v60 = vpop.f32.mrf.mxu2 }
 0x1e0   : > { %v2395_v9 = vpop.f32.mrf.mxu1 }
 0x1e7   : > { %v4263_v57 = vpop.f32.mrf.mxu2 }
 0x1ef   : > { %v4266_v20 = vpop.f32.mrf.mxu2 }
 0x1f7   : > { %v4269_v33 = vpop.f32.mrf.mxu2 }
 0x1ff   : > { %v2414_v56 = vpop.f32.mrf.mxu2 }
 0x200   : > { %v2415_v62 = vadd.f32 %v2414_v56, %v2386_v4  ;;  %v2280_v56 = vadd.f32 %v4241_v49, %v2251_v61 }
 0x202   : > { %v2435_v40 = vmul.f32 %v4274_v41, %v2415_v62  ;;  %v2364_v62 = vadd.f32 %v2363_v26, %v2335_v38  ;;  %v2309_v21 = vadd.f32 %v4257_v60, %v2280_v56  ;;  %v2282_v60 = vadd.f32 %v4247_v24, %v2253_v10  ;;  %v2368_v24 = vpop.f32.mrf.mxu0 }
 0x203   : > { %v726_v10 = vmul.f32 %v4272_v32, %v4189_v36  ;;  %v727_v36 = vmul.f32 %v4272_v32, %v4205_v6 }
 0x204   : > { %v2444_v53 = vadd.f32 %v4281_v23, %v2435_v40  ;;  %v731_v40 = vadd.f32 %v4278_v27, %v722_v8  ;;  %v2393_v49 = vadd.f32 %v2392_v30, %v2364_v62  ;;  %v2311_v63 = vadd.f32 %v4263_v57, %v2282_v60 }
 0x205   : > { %v2285_v57 = vadd.f32 %v4253_v22, %v2256_v12  ;;  %v735_v5 = vadd.f32 %v4278_v27, %v726_v10 }
 0x206   : > { %v2452_v18 = vadd.f32 %v2444_v53, %v729_v17  ;;  %v2338_v17 = vadd.f32 %v2337_v14, %v2309_v21  ;;  %v725_v14 = vmul.f32 %v4272_v32, %v4181_v35 }
 0x207   : > { %v2416_v44 = vpop.f32.mrf.mxu2  ;;  %v2314_v59 = vadd.f32 %v4266_v20, %v2285_v57  ;;  %v2287_v20 = vadd.f32 %v4261_v48, %v2258_v15 }
 0x208   : > { %v2460_v47 = vmax.f32 %v2452_v18, 0.0  ;;  %v2417_v31 = vadd.f32 %v2416_v44, %v2388_v3  ;;  %v2339_v18 = vpop.f32.mrf.mxu3  ;;  %v2367_v42 = vadd.f32 %v2366_v25, %v2338_v17  ;;  %v734_v62 = vadd.f32 %v4278_v27, %v725_v14 }
 0x20a   : > { %2468 = vst [vmem:[%s4292_s29] sm:$0xff] %v2460_v47  ;;  %v2436_v19 = vmul.f32 %v4274_v41, %v2417_v31  ;;  %v2396_v47 = vadd.f32 %v2395_v9, %v2367_v42  ;;  %v2340_v31 = vadd.f32 %v2339_v18, %v2311_v63  ;;  %v2371_v50 = vpop.f32.mrf.mxu0  ;;  %v736_v63 = vadd.f32 %v4278_v27, %v727_v36 }
 0x20c   : > { %v2445_v46 = vadd.f32 %v4281_v23, %v2436_v19  ;;  %v2369_v61 = vadd.f32 %v2368_v24, %v2340_v31 }
 0x20e   : > { %v2453_v4 = vadd.f32 %v2445_v46, %v730_v2  ;;  %v2397_v2 = vpop.f32.mrf.mxu1 }
 0x20f   : > { %v2419_v45 = vpop.f32.mrf.mxu2  ;;  %v2398_v38 = vadd.f32 %v2397_v2, %v2369_v61 }
 0x210   : > { %v2461_v7 = vmax.f32 %v2453_v4, 0.0  ;;  %v2420_v13 = vadd.f32 %v2419_v45, %v2391_v28  ;;  %v2342_v30 = vpop.f32.mrf.mxu3  ;;  %v733_v28 = vadd.f32 %v4278_v27, %v724_v1 }
 0x211   : > { %v2343_v4 = vadd.f32 %v2342_v30, %v2314_v59 }
 0x212   : > { %2469 = vst [vmem:[%s4292_s29 + $0x8] sm:$0xff] %v2461_v7  ;;  %v2437_v11 = vmul.f32 %v4274_v41, %v2420_v13  ;;  %v2316_v7 = vadd.f32 %v4269_v33, %v2287_v20 }
 0x213   : > { %v2372_v37 = vadd.f32 %v2371_v50, %v2343_v4 }
 0x214   : > { %v2446_v51 = vadd.f32 %v4281_v23, %v2437_v11 }
 0x216   : > { %v2454_v34 = vadd.f32 %v2446_v51, %v731_v40  ;;  %v2400_v13 = vpop.f32.mrf.mxu1 }
 0x217   : > { %v2421_v53 = vpop.f32.mrf.mxu2  ;;  %v2401_v25 = vadd.f32 %v2400_v13, %v2372_v37 }
 0x218   : > { %v2462_v3 = vmax.f32 %v2454_v34, 0.0  ;;  %v2422_v39 = vadd.f32 %v2421_v53, %v2393_v49  ;;  %v2344_v11 = vpop.f32.mrf.mxu3  ;;  %v2373_v49 = vpop.f32.mrf.mxu0 }
 0x219   : > { %v2345_v35 = vadd.f32 %v2344_v11, %v2316_v7 }
 0x21a   : > { %2470 = vst [vmem:[%s4292_s29 + $0x10] sm:$0xff] %v2462_v3  ;;  %v2438_v44 = vmul.f32 %v4274_v41, %v2422_v39 }
 0x21b   : > { %v2374_v17 = vadd.f32 %v2373_v49, %v2345_v35 }
 0x21c   : > { %v2447_v52 = vadd.f32 %v4281_v23, %v2438_v44 }
 0x21e   : > { %v2455_v0 = vadd.f32 %v2447_v52, %v732_v29  ;;  %v2402_v53 = vpop.f32.mrf.mxu1 }
 0x21f   : > { %v2424_v26 = vpop.f32.mrf.mxu2  ;;  %v2403_v60 = vadd.f32 %v2402_v53, %v2374_v17 }
 0x220   : > { %v2463_v16 = vmax.f32 %v2455_v0, 0.0  ;;  %v2425_v19 = vadd.f32 %v2424_v26, %v2396_v47 }
 0x222   : > { %2471 = vst [vmem:[%s4292_s29 + $0x18] sm:$0xff] %v2463_v16  ;;  %v2439_v46 = vmul.f32 %v4274_v41, %v2425_v19 }
 0x224   : > { %v2448_v22 = vadd.f32 %v4281_v23, %v2439_v46 }
 0x226   : > { %v2456_v43 = vadd.f32 %v2448_v22, %v733_v28 }
 0x227   : > { %v2426_v8 = vpop.f32.mrf.mxu2 }
 0x228   : > { %v2464_v45 = vmax.f32 %v2456_v43, 0.0  ;;  %v2427_v56 = vadd.f32 %v2426_v8, %v2398_v38 }
 0x22a   : > { %2472 = vst [vmem:[%s4292_s29 + $0x20] sm:$0xff] %v2464_v45  ;;  %v2440_v54 = vmul.f32 %v4274_v41, %v2427_v56 }
 0x22c   : > { %v2449_v21 = vadd.f32 %v4281_v23, %v2440_v54 }
 0x22e   : > { %v2457_v40 = vadd.f32 %v2449_v21, %v734_v62 }
 0x22f   : > { %v2429_v48 = vpop.f32.mrf.mxu2 }
 0x230   : > { %v2465_v51 = vmax.f32 %v2457_v40, 0.0  ;;  %v2430_v33 = vadd.f32 %v2429_v48, %v2401_v25 }
 0x232   : > { %2473 = vst [vmem:[%s4292_s29 + $0x28] sm:$0xff] %v2465_v51  ;;  %v2441_v34 = vmul.f32 %v4274_v41, %v2430_v33 }
 0x234   : > { %v2450_v9 = vadd.f32 %v4281_v23, %v2441_v34 }
 0x236   : > { %v2458_v58 = vadd.f32 %v2450_v9, %v735_v5 }
 0x237   : > { %v2431_v3 = vpop.f32.mrf.mxu2 }
 0x238   : > { %v2466_v39 = vmax.f32 %v2458_v58, 0.0  ;;  %v2432_v18 = vadd.f32 %v2431_v3, %v2403_v60 }
 0x23a   : > { %2474 = vst [vmem:[%s4292_s29 + $0x30] sm:$0xff] %v2466_v39  ;;  %v2442_v42 = vmul.f32 %v4274_v41, %v2432_v18 }
 0x23c   : > { %v2451_v44 = vadd.f32 %v4281_v23, %v2442_v42 }
 0x23e   : > { %v2459_v29 = vadd.f32 %v2451_v44, %v736_v63 }
 0x240   : > { %v2467_v6 = vmax.f32 %v2459_v29, 0.0 }
 0x242   : > { %2475 = vst [vmem:[%s4292_s29 + $0x38] sm:$0xff] %v2467_v6 }
 0x243   : > { %3517 = shalt.err (!%p3514_p10)
}
 0x244   : > { %s3575_s1 = smov 128   ;;  %s3576_s8 = smov 8  }
 0x245   : > { %3258 = dma.vmem_to_hbm [thread:$0]  (%p3691_p3), %s2490_s22, 1024, %s2492_s10, %s2477_s13, %s3575_s1, %s3575_s1, %s3576_s8  }
 0x246 PF: > { %s2506_s24 = sand.u32 1, %s3552_s18   ;;  %p4409_p12 = scmp.ge.s32.totalorder %s3564_s21, 2 }
 0x247   : > { %s2507_s29 = scalar_lea.sflag [#allocation5], %s2506_s24 }
 0x248   : > { %p3278_p13 = pnand %p4409_p12, %p3642_p6 }
 0x24a   : > { %p3279_p0 = pneg %p3278_p13 }
 0x24c   : > { %3547 = dma.done.wait (%p3279_p0), %s2507_s29, 1024  }
 0x24d   : > { %3549 = vsyncadd (%p3279_p0), %s2507_s29, 4294966272  ;;  %p20_p5 = scmp.ge.s32.totalorder %s3681_s9, 4   ;;  %s4410_s18 = smov %s3556_s19 }
 0x24e   : > { %s4411_s19 = smov %s3560_s20  ;;  %s4412_s20 = smov %s3697_s11 }
 0x24f   : > { %s4413_s21 = smov %s3681_s9  ;;  %22 = sbr.rel (!%p20_p5) target bundleno = 9 (0x9), region = 104 }
 0x254   :  { %2513 = vsyncpa [#allocation4], 1 }
 0x255   :  { %2515 = vsyncpa [#allocation4 + $0x1], 1 }
 0x256   :  { %2516 = vsyncpa [#allocation7], 1 }
 0x257   :  { %2517 = vsyncpa [#allocation10], 1 }
 0x258   :  { %2518 = vsyncpa [#allocation5], 1 }
 0x259   :  { %2520 = vsyncpa [#allocation5 + $0x1], 1 }

</bundles_post_ra>
